<compile_context>
chip_gen: v6e
topology: v6e:2x2x1
jax: 0.10.0
libtpu: 0.0.40
codegen_flags: <defaults>
</compile_context>

<pallas_src>
import jax
import jax.numpy as jnp
import numpy as np
from jax.experimental import pallas as pl
from jax.experimental.pallas import tpu as pltpu


# ----------------------------- in-kernel math ------------------------------ #

def softplus100(x):
    # PyTorch F.softplus(x, beta=100) with default threshold=20:
    #   x                        if 100*x > 20
    #   log(1 + exp(100*x))/100  otherwise
    z = 100.0 * x
    sp = jnp.log(1.0 + jnp.exp(jnp.minimum(z, 20.0))) * (1.0 / 100.0)
    return jnp.where(z > 20.0, x, sp)


# ----------------------- host-side (jitted) weight prep -------------------- #

def _banded_conv_weight(w_mat, k, cin, width):
    """(k*k*cin, cout) conv weight -> (k, width*cin, wo*cout) banded matrices.

    band[i, (wo+j)*cin + ci, wo*cout + co] == w[i, j, ci, co], so a VALID conv
    of an (H, W*cin) activation A is   sum_i  A[i:i+ho, :] @ band[i].
    """
    cout = w_mat.shape[1]
    wo = width - k + 1
    w4 = w_mat.reshape(k, k, cin, cout)                          # (i, j, ci, co)
    p = jnp.pad(w4, ((0, 0), (0, width - k), (0, 0), (0, 0)))    # (i, W, ci, co)
    # rolled[s][i, w_in, ci, co] = w4[i, w_in - s, ci, co] inside the band, 0 outside.
    rolled = [jnp.roll(p, shift=s, axis=1) for s in range(wo)]
    b = jnp.stack(rolled, axis=0)                                # (wo, i, W, ci, co)
    return b.transpose(1, 2, 3, 0, 4).reshape(k, width * cin, wo * cout)


def _pool_mats(ho, wo, cout):
    """Row/col matrices implementing avg_pool2d(2,2) on a (ho, wo*cout) activation."""
    hp, wp = ho // 2, wo // 2
    prow = np.zeros((hp, ho), np.float32)                        # carries the 0.25
    prow[np.arange(hp), 2 * np.arange(hp)] = 0.25
    prow[np.arange(hp), 2 * np.arange(hp) + 1] = 0.25
    swp = np.zeros((wp, wo), np.float32)
    swp[np.arange(wp), 2 * np.arange(wp)] = 1.0
    swp[np.arange(wp), 2 * np.arange(wp) + 1] = 1.0
    pcol = np.kron(swp.T, np.eye(cout, dtype=np.float32))        # (wo*cout, wp*cout)
    return jnp.asarray(prow), jnp.asarray(pcol)


# ------------------------------ fused forward ------------------------------ #

_CONV_CFG = (("conv1", 5), ("conv2", 3), ("conv3", 3))


@jax.jit
def smart_simple_net_forward(x_nchw, params):
    n, cin0, hh, ww = x_nchw.shape
    x = jnp.transpose(x_nchw, (0, 2, 3, 1)).astype(jnp.float32)   # NHWC
    x2d = x.reshape(n, hh, ww * cin0)                             # (N, H, W*C)

    conv_inputs = []
    layer_dims = []
    h, w, cin = hh, ww, cin0
    for name, k in _CONV_CFG:
        wmat = params[name + "_w"].astype(jnp.float32)
        bias = params[name + "_b"].astype(jnp.float32).reshape(1, -1)
        cout = wmat.shape[1]
        ho, wo = h - k + 1, w - k + 1
        hp, wp = ho // 2, wo // 2
        band = _banded_conv_weight(wmat, k, cin, w)    # (k, w*cin, wo*cout)
        btile = jnp.tile(bias, (1, wo))                # (1, wo*cout)
        prow, pcol = _pool_mats(ho, wo, cout)
        conv_inputs += [band, btile, prow, pcol]
        layer_dims.append((k, ho, wo))
        h, w, cin = hp, wp, cout

    hp3, wp3, c3 = h, w, cin
    f1 = params["fc1_w"].shape[1]
    n_out = params["fc3_w"].shape[1]
    # Fold the PyTorch NCHW flatten (idx = c*hp3*wp3 + h*wp3 + w) into fc1:
    # wfc1_rows[h, w*c3 + c, f] == fc1_w[c*hp3*wp3 + h*wp3 + w, f].
    wfc1_rows = (params["fc1_w"].astype(jnp.float32)
                 .reshape(c3, hp3, wp3, f1)
                 .transpose(1, 2, 0, 3)
                 .reshape(hp3, wp3 * c3, f1))
    fc_inputs = [wfc1_rows,
                 params["fc1_b"].astype(jnp.float32),
                 params["fc2_w"].astype(jnp.float32),
                 params["fc2_b"].astype(jnp.float32),
                 params["fc3_w"].astype(jnp.float32),
                 params["fc3_b"].astype(jnp.float32)]

    n_conv_refs = 4 * len(layer_dims)

    def kernel(x_ref, *refs):
        conv_refs = refs[:n_conv_refs]
        (wfc1_ref, bfc1_ref, wfc2_ref, bfc2_ref,
         wfc3_ref, bfc3_ref, out_ref) = refs[n_conv_refs:]

        a = x_ref[0]                                   # (H, W*Cin), one sample
        for li, (k, ho, wo) in enumerate(layer_dims):
            band_ref, bt_ref, prow_ref, pcol_ref = conv_refs[4 * li: 4 * li + 4]
            acc = jnp.dot(a[0:ho, :], band_ref[0],
                          preferred_element_type=jnp.float32)
            for i in range(1, k):
                acc += jnp.dot(a[i:i + ho, :], band_ref[i],
                               preferred_element_type=jnp.float32)
            act = softplus100(acc + bt_ref[...])
            # 2x2 average pool via two tiny matmuls (row-pool, then col-pool).
            a = jnp.dot(jnp.dot(prow_ref[...], act,
                                preferred_element_type=jnp.float32),
                        pcol_ref[...], preferred_element_type=jnp.float32)

        # fc1 (NCHW flatten folded into permuted per-row fc1 weights).
        z = bfc1_ref[...]
        for r in range(hp3):
            z = z + jnp.dot(a[r:r + 1, :], wfc1_ref[r],
                            preferred_element_type=jnp.float32)
        hvec = softplus100(z)
        hvec = softplus100(jnp.dot(hvec, wfc2_ref[...],
                                   preferred_element_type=jnp.float32)
                           + bfc2_ref[...])
        logits = jnp.dot(hvec, wfc3_ref[...],
                         preferred_element_type=jnp.float32) + bfc3_ref[...]
        m = jnp.max(logits, axis=-1, keepdims=True)
        lse = jnp.log(jnp.sum(jnp.exp(logits - m), axis=-1, keepdims=True)) + m
        out_ref[0] = logits - lse

    def full_spec(shape):
        zeros = (0,) * len(shape)
        return pl.BlockSpec(shape, lambda b: zeros)

    weight_inputs = conv_inputs + fc_inputs
    in_specs = ([pl.BlockSpec((1, hh, ww * cin0), lambda b: (b, 0, 0))]
                + [full_spec(a.shape) for a in weight_inputs])

    out = pl.pallas_call(
        kernel,
        out_shape=jax.ShapeDtypeStruct((n, 1, n_out), jnp.float32),
        grid=(n,),
        in_specs=in_specs,
        out_specs=pl.BlockSpec((1, 1, n_out), lambda b: (b, 0, 0)),
        compiler_params=pltpu.CompilerParams(
            dimension_semantics=("parallel",)),
    )(x2d, *weight_inputs)
    return out.reshape(n, n_out)


# ------------------------- pure-JAX reference (check) ---------------------- #

def reference_forward(x_nchw, params):
    x = jnp.transpose(x_nchw, (0, 2, 3, 1)).astype(jnp.float32)
    for name, k in _CONV_CFG:
        wmat = params[name + "_w"]
        cout = wmat.shape[1]
        w = wmat.reshape(k, k, -1, cout)  # HWIO, (i, j, ci) row ordering
        y = jax.lax.conv_general_dilated(
            x, w, (1, 1), "VALID",
            dimension_numbers=("NHWC", "HWIO", "NHWC"))
        y = softplus100(y + params[name + "_b"].reshape(1, 1, 1, -1))
        nb, hh, ww, cc = y.shape
        x = y.reshape(nb, hh // 2, 2, ww // 2, 2, cc).mean(axis=(2, 4))
    feat = jnp.transpose(x, (0, 3, 1, 2)).reshape(x.shape[0], -1)
    h = softplus100(feat @ params["fc1_w"] + params["fc1_b"])
    h = softplus100(h @ params["fc2_w"] + params["fc2_b"])
    z = h @ params["fc3_w"] + params["fc3_b"]
    return jax.nn.log_softmax(z, axis=1)


# --------------------------------- params ---------------------------------- #

def init_params(key, layer_sizes):
    c1, c2, c3, f1, f2 = layer_sizes
    shapes = {
        "conv1_w": (5 * 5 * 3, c1), "conv1_b": (1, c1),
        "conv2_w": (3 * 3 * c1, c2), "conv2_b": (1, c2),
        "conv3_w": (3 * 3 * c2, c3), "conv3_b": (1, c3),
        "fc1_w": (c3 * 2 * 2, f1),   "fc1_b": (1, f1),
        "fc2_w": (f1, f2),           "fc2_b": (1, f2),
        "fc3_w": (f2, 10),           "fc3_b": (1, 10),
    }
    params = {}
    names = sorted(shapes)
    keys = jax.random.split(key, len(names))
    for kk, name in zip(keys, names):
        shp = shapes[name]
        fan_in = shp[0] if name.endswith("_w") else shp[1]
        params[name] = jax.random.normal(kk, shp, jnp.float32) / jnp.sqrt(
            jnp.float32(fan_in))
    return params


# ----------------------------------- main ----------------------------------- #

if __name__ == "__main__":
    # smartSimpleNet(layerSizes=[4, 8, 8, 32, 16]); fc1 expects 8*2*2 features,
    # which implies a 32x32 spatial input: 32 ->conv5-> 28 ->pool-> 14
    # ->conv3-> 12 ->pool-> 6 ->conv3-> 4 ->pool-> 2.
    layer_sizes = [4, 8, 8, 32, 16]
    key = jax.random.PRNGKey(0)
    k_params, k_x = jax.random.split(key)
    params = init_params(k_params, layer_sizes)
    x = jax.random.normal(k_x, (2, 3, 32, 32), jnp.float32)  # NCHW, like PyTorch

    out = jax.block_until_ready(smart_simple_net_forward(x, params))
    ref = jax.block_until_ready(reference_forward(x, params))
    np.testing.assert_allclose(np.asarray(out), np.asarray(ref),
                               rtol=2e-2, atol=2e-2)
    assert out.shape == (2, 10) and bool(jnp.all(jnp.isfinite(out)))

    print("KERNEL_OK")
</pallas_src>

<mosaic_0001>
module attributes {stable_mosaic.version = 11 : i64} {
  func.func @kernel(%arg0: i32, %arg1: memref<1x32x96xf32, #tpu.memory_space<vmem>>, %arg2: memref<5x96x112xf32, #tpu.memory_space<vmem>>, %arg3: memref<1x112xf32, #tpu.memory_space<vmem>>, %arg4: memref<14x28xf32, #tpu.memory_space<vmem>>, %arg5: memref<112x56xf32, #tpu.memory_space<vmem>>, %arg6: memref<3x56x96xf32, #tpu.memory_space<vmem>>, %arg7: memref<1x96xf32, #tpu.memory_space<vmem>>, %arg8: memref<6x12xf32, #tpu.memory_space<vmem>>, %arg9: memref<96x48xf32, #tpu.memory_space<vmem>>, %arg10: memref<3x48x32xf32, #tpu.memory_space<vmem>>, %arg11: memref<1x32xf32, #tpu.memory_space<vmem>>, %arg12: memref<2x4xf32, #tpu.memory_space<vmem>>, %arg13: memref<32x16xf32, #tpu.memory_space<vmem>>, %arg14: memref<2x16x32xf32, #tpu.memory_space<vmem>>, %arg15: memref<1x32xf32, #tpu.memory_space<vmem>>, %arg16: memref<32x16xf32, #tpu.memory_space<vmem>>, %arg17: memref<1x16xf32, #tpu.memory_space<vmem>>, %arg18: memref<16x10xf32, #tpu.memory_space<vmem>>, %arg19: memref<1x10xf32, #tpu.memory_space<vmem>>, %arg20: memref<1x1x10xf32, #tpu.memory_space<vmem>>) attributes {dimension_semantics = [#tpu.dimension_semantics<parallel>], iteration_bounds = array<i64: 2>, scalar_prefetch = 0 : i64, scratch_operands = 0 : i64, tpu.core_type = #tpu.core_type<tc>, window_params = [{transform_indices = @transform_0, window_bounds = array<i64: 1, 32, 96>}, {pipeline_mode = #tpu.pipeline_mode<synchronous>, transform_indices = @transform_1, window_bounds = array<i64: 5, 96, 112>}, {pipeline_mode = #tpu.pipeline_mode<synchronous>, transform_indices = @transform_2, window_bounds = array<i64: 1, 112>}, {pipeline_mode = #tpu.pipeline_mode<synchronous>, transform_indices = @transform_3, window_bounds = array<i64: 14, 28>}, {pipeline_mode = #tpu.pipeline_mode<synchronous>, transform_indices = @transform_4, window_bounds = array<i64: 112, 56>}, {pipeline_mode = #tpu.pipeline_mode<synchronous>, transform_indices = @transform_5, window_bounds = array<i64: 3, 56, 96>}, {pipeline_mode = #tpu.pipeline_mode<synchronous>, transform_indices = @transform_6, window_bounds = array<i64: 1, 96>}, {pipeline_mode = #tpu.pipeline_mode<synchronous>, transform_indices = @transform_7, window_bounds = array<i64: 6, 12>}, {pipeline_mode = #tpu.pipeline_mode<synchronous>, transform_indices = @transform_8, window_bounds = array<i64: 96, 48>}, {pipeline_mode = #tpu.pipeline_mode<synchronous>, transform_indices = @transform_9, window_bounds = array<i64: 3, 48, 32>}, {pipeline_mode = #tpu.pipeline_mode<synchronous>, transform_indices = @transform_10, window_bounds = array<i64: 1, 32>}, {pipeline_mode = #tpu.pipeline_mode<synchronous>, transform_indices = @transform_11, window_bounds = array<i64: 2, 4>}, {pipeline_mode = #tpu.pipeline_mode<synchronous>, transform_indices = @transform_12, window_bounds = array<i64: 32, 16>}, {pipeline_mode = #tpu.pipeline_mode<synchronous>, transform_indices = @transform_13, window_bounds = array<i64: 2, 16, 32>}, {pipeline_mode = #tpu.pipeline_mode<synchronous>, transform_indices = @transform_14, window_bounds = array<i64: 1, 32>}, {pipeline_mode = #tpu.pipeline_mode<synchronous>, transform_indices = @transform_15, window_bounds = array<i64: 32, 16>}, {pipeline_mode = #tpu.pipeline_mode<synchronous>, transform_indices = @transform_16, window_bounds = array<i64: 1, 16>}, {pipeline_mode = #tpu.pipeline_mode<synchronous>, transform_indices = @transform_17, window_bounds = array<i64: 16, 10>}, {pipeline_mode = #tpu.pipeline_mode<synchronous>, transform_indices = @transform_18, window_bounds = array<i64: 1, 10>}, {transform_indices = @transform_19, window_bounds = array<i64: 1, 1, 10>}]} {
    %c0 = arith.constant 0 : index
    %c0_0 = arith.constant 0 : index
    %c0_1 = arith.constant 0 : index
    %0 = vector.load %arg1[%c0, %c0_0, %c0_1] : memref<1x32x96xf32, #tpu.memory_space<vmem>>, vector<1x32x96xf32>
    %1 = vector.shape_cast %0 : vector<1x32x96xf32> to vector<32x96xf32>
    %2 = vector.extract_strided_slice %1 {offsets = [0, 0], sizes = [28, 96], strides = [1, 1]} : vector<32x96xf32> to vector<28x96xf32>
    %c0_2 = arith.constant 0 : index
    %c0_3 = arith.constant 0 : index
    %c0_4 = arith.constant 0 : index
    %3 = vector.load %arg2[%c0_2, %c0_3, %c0_4] : memref<5x96x112xf32, #tpu.memory_space<vmem>>, vector<1x96x112xf32>
    %4 = vector.shape_cast %3 : vector<1x96x112xf32> to vector<96x112xf32>
    %cst = arith.constant dense<0.000000e+00> : vector<28x112xf32>
    %5 = tpu.matmul %2, %4, %cst {dimension_numbers = #tpu.dot_dimension_numbers<[1], [0], [0], [1], [0, 0, 1, 1], [], []>} : vector<28x96xf32>, vector<96x112xf32>, vector<28x112xf32> -> vector<28x112xf32>
    %6 = vector.extract_strided_slice %1 {offsets = [1, 0], sizes = [28, 96], strides = [1, 1]} : vector<32x96xf32> to vector<28x96xf32>
    %c1 = arith.constant 1 : index
    %c0_5 = arith.constant 0 : index
    %c0_6 = arith.constant 0 : index
    %7 = vector.load %arg2[%c1, %c0_5, %c0_6] : memref<5x96x112xf32, #tpu.memory_space<vmem>>, vector<1x96x112xf32>
    %8 = vector.shape_cast %7 : vector<1x96x112xf32> to vector<96x112xf32>
    %cst_7 = arith.constant dense<0.000000e+00> : vector<28x112xf32>
    %9 = tpu.matmul %6, %8, %cst_7 {dimension_numbers = #tpu.dot_dimension_numbers<[1], [0], [0], [1], [0, 0, 1, 1], [], []>} : vector<28x96xf32>, vector<96x112xf32>, vector<28x112xf32> -> vector<28x112xf32>
    %10 = arith.addf %5, %9 : vector<28x112xf32>
    %11 = vector.extract_strided_slice %1 {offsets = [2, 0], sizes = [28, 96], strides = [1, 1]} : vector<32x96xf32> to vector<28x96xf32>
    %c2 = arith.constant 2 : index
    %c0_8 = arith.constant 0 : index
    %c0_9 = arith.constant 0 : index
    %12 = vector.load %arg2[%c2, %c0_8, %c0_9] : memref<5x96x112xf32, #tpu.memory_space<vmem>>, vector<1x96x112xf32>
    %13 = vector.shape_cast %12 : vector<1x96x112xf32> to vector<96x112xf32>
    %cst_10 = arith.constant dense<0.000000e+00> : vector<28x112xf32>
    %14 = tpu.matmul %11, %13, %cst_10 {dimension_numbers = #tpu.dot_dimension_numbers<[1], [0], [0], [1], [0, 0, 1, 1], [], []>} : vector<28x96xf32>, vector<96x112xf32>, vector<28x112xf32> -> vector<28x112xf32>
    %15 = arith.addf %10, %14 : vector<28x112xf32>
    %16 = vector.extract_strided_slice %1 {offsets = [3, 0], sizes = [28, 96], strides = [1, 1]} : vector<32x96xf32> to vector<28x96xf32>
    %c3 = arith.constant 3 : index
    %c0_11 = arith.constant 0 : index
    %c0_12 = arith.constant 0 : index
    %17 = vector.load %arg2[%c3, %c0_11, %c0_12] : memref<5x96x112xf32, #tpu.memory_space<vmem>>, vector<1x96x112xf32>
    %18 = vector.shape_cast %17 : vector<1x96x112xf32> to vector<96x112xf32>
    %cst_13 = arith.constant dense<0.000000e+00> : vector<28x112xf32>
    %19 = tpu.matmul %16, %18, %cst_13 {dimension_numbers = #tpu.dot_dimension_numbers<[1], [0], [0], [1], [0, 0, 1, 1], [], []>} : vector<28x96xf32>, vector<96x112xf32>, vector<28x112xf32> -> vector<28x112xf32>
    %20 = arith.addf %15, %19 : vector<28x112xf32>
    %21 = vector.extract_strided_slice %1 {offsets = [4, 0], sizes = [28, 96], strides = [1, 1]} : vector<32x96xf32> to vector<28x96xf32>
    %c4 = arith.constant 4 : index
    %c0_14 = arith.constant 0 : index
    %c0_15 = arith.constant 0 : index
    %22 = vector.load %arg2[%c4, %c0_14, %c0_15] : memref<5x96x112xf32, #tpu.memory_space<vmem>>, vector<1x96x112xf32>
    %23 = vector.shape_cast %22 : vector<1x96x112xf32> to vector<96x112xf32>
    %cst_16 = arith.constant dense<0.000000e+00> : vector<28x112xf32>
    %24 = tpu.matmul %21, %23, %cst_16 {dimension_numbers = #tpu.dot_dimension_numbers<[1], [0], [0], [1], [0, 0, 1, 1], [], []>} : vector<28x96xf32>, vector<96x112xf32>, vector<28x112xf32> -> vector<28x112xf32>
    %25 = arith.addf %20, %24 : vector<28x112xf32>
    %c0_17 = arith.constant 0 : index
    %c0_18 = arith.constant 0 : index
    %26 = vector.load %arg3[%c0_17, %c0_18] : memref<1x112xf32, #tpu.memory_space<vmem>>, vector<1x112xf32>
    %27 = vector.broadcast %26 : vector<1x112xf32> to vector<28x112xf32>
    %28 = arith.addf %25, %27 : vector<28x112xf32>
    %cst_19 = arith.constant 1.000000e+02 : f32
    %29 = vector.broadcast %cst_19 : f32 to vector<28x112xf32>
    %30 = arith.mulf %29, %28 : vector<28x112xf32>
    %cst_20 = arith.constant 2.000000e+01 : f32
    %31 = vector.broadcast %cst_20 : f32 to vector<28x112xf32>
    %32 = arith.minimumf %30, %31 : vector<28x112xf32>
    %33 = math.exp %32 : vector<28x112xf32>
    %cst_21 = arith.constant 1.000000e+00 : f32
    %34 = vector.broadcast %cst_21 : f32 to vector<28x112xf32>
    %35 = arith.addf %34, %33 : vector<28x112xf32>
    %36 = math.log %35 : vector<28x112xf32>
    %cst_22 = arith.constant 0.00999999977 : f32
    %37 = vector.broadcast %cst_22 : f32 to vector<28x112xf32>
    %38 = arith.mulf %36, %37 : vector<28x112xf32>
    %cst_23 = arith.constant 2.000000e+01 : f32
    %39 = vector.broadcast %cst_23 : f32 to vector<28x112xf32>
    %40 = arith.cmpf ogt, %30, %39 : vector<28x112xf32>
    %41 = arith.select %40, %28, %38 : vector<28x112xi1>, vector<28x112xf32>
    %c0_24 = arith.constant 0 : index
    %c0_25 = arith.constant 0 : index
    %42 = vector.load %arg4[%c0_24, %c0_25] : memref<14x28xf32, #tpu.memory_space<vmem>>, vector<14x28xf32>
    %cst_26 = arith.constant dense<0.000000e+00> : vector<14x112xf32>
    %43 = tpu.matmul %42, %41, %cst_26 {dimension_numbers = #tpu.dot_dimension_numbers<[1], [0], [0], [1], [0, 0, 1, 1], [], []>} : vector<14x28xf32>, vector<28x112xf32>, vector<14x112xf32> -> vector<14x112xf32>
    %c0_27 = arith.constant 0 : index
    %c0_28 = arith.constant 0 : index
    %44 = vector.load %arg5[%c0_27, %c0_28] : memref<112x56xf32, #tpu.memory_space<vmem>>, vector<112x56xf32>
    %cst_29 = arith.constant dense<0.000000e+00> : vector<14x56xf32>
    %45 = tpu.matmul %43, %44, %cst_29 {dimension_numbers = #tpu.dot_dimension_numbers<[1], [0], [0], [1], [0, 0, 1, 1], [], []>} : vector<14x112xf32>, vector<112x56xf32>, vector<14x56xf32> -> vector<14x56xf32>
    %46 = vector.extract_strided_slice %45 {offsets = [0, 0], sizes = [12, 56], strides = [1, 1]} : vector<14x56xf32> to vector<12x56xf32>
    %c0_30 = arith.constant 0 : index
    %c0_31 = arith.constant 0 : index
    %c0_32 = arith.constant 0 : index
    %47 = vector.load %arg6[%c0_30, %c0_31, %c0_32] : memref<3x56x96xf32, #tpu.memory_space<vmem>>, vector<1x56x96xf32>
    %48 = vector.shape_cast %47 : vector<1x56x96xf32> to vector<56x96xf32>
    %cst_33 = arith.constant dense<0.000000e+00> : vector<12x96xf32>
    %49 = tpu.matmul %46, %48, %cst_33 {dimension_numbers = #tpu.dot_dimension_numbers<[1], [0], [0], [1], [0, 0, 1, 1], [], []>} : vector<12x56xf32>, vector<56x96xf32>, vector<12x96xf32> -> vector<12x96xf32>
    %50 = vector.extract_strided_slice %45 {offsets = [1, 0], sizes = [12, 56], strides = [1, 1]} : vector<14x56xf32> to vector<12x56xf32>
    %c1_34 = arith.constant 1 : index
    %c0_35 = arith.constant 0 : index
    %c0_36 = arith.constant 0 : index
    %51 = vector.load %arg6[%c1_34, %c0_35, %c0_36] : memref<3x56x96xf32, #tpu.memory_space<vmem>>, vector<1x56x96xf32>
    %52 = vector.shape_cast %51 : vector<1x56x96xf32> to vector<56x96xf32>
    %cst_37 = arith.constant dense<0.000000e+00> : vector<12x96xf32>
    %53 = tpu.matmul %50, %52, %cst_37 {dimension_numbers = #tpu.dot_dimension_numbers<[1], [0], [0], [1], [0, 0, 1, 1], [], []>} : vector<12x56xf32>, vector<56x96xf32>, vector<12x96xf32> -> vector<12x96xf32>
    %54 = arith.addf %49, %53 : vector<12x96xf32>
    %55 = vector.extract_strided_slice %45 {offsets = [2, 0], sizes = [12, 56], strides = [1, 1]} : vector<14x56xf32> to vector<12x56xf32>
    %c2_38 = arith.constant 2 : index
    %c0_39 = arith.constant 0 : index
    %c0_40 = arith.constant 0 : index
    %56 = vector.load %arg6[%c2_38, %c0_39, %c0_40] : memref<3x56x96xf32, #tpu.memory_space<vmem>>, vector<1x56x96xf32>
    %57 = vector.shape_cast %56 : vector<1x56x96xf32> to vector<56x96xf32>
    %cst_41 = arith.constant dense<0.000000e+00> : vector<12x96xf32>
    %58 = tpu.matmul %55, %57, %cst_41 {dimension_numbers = #tpu.dot_dimension_numbers<[1], [0], [0], [1], [0, 0, 1, 1], [], []>} : vector<12x56xf32>, vector<56x96xf32>, vector<12x96xf32> -> vector<12x96xf32>
    %59 = arith.addf %54, %58 : vector<12x96xf32>
    %c0_42 = arith.constant 0 : index
    %c0_43 = arith.constant 0 : index
    %60 = vector.load %arg7[%c0_42, %c0_43] : memref<1x96xf32, #tpu.memory_space<vmem>>, vector<1x96xf32>
    %61 = vector.broadcast %60 : vector<1x96xf32> to vector<12x96xf32>
    %62 = arith.addf %59, %61 : vector<12x96xf32>
    %cst_44 = arith.constant 1.000000e+02 : f32
    %63 = vector.broadcast %cst_44 : f32 to vector<12x96xf32>
    %64 = arith.mulf %63, %62 : vector<12x96xf32>
    %cst_45 = arith.constant 2.000000e+01 : f32
    %65 = vector.broadcast %cst_45 : f32 to vector<12x96xf32>
    %66 = arith.minimumf %64, %65 : vector<12x96xf32>
    %67 = math.exp %66 : vector<12x96xf32>
    %cst_46 = arith.constant 1.000000e+00 : f32
    %68 = vector.broadcast %cst_46 : f32 to vector<12x96xf32>
    %69 = arith.addf %68, %67 : vector<12x96xf32>
    %70 = math.log %69 : vector<12x96xf32>
    %cst_47 = arith.constant 0.00999999977 : f32
    %71 = vector.broadcast %cst_47 : f32 to vector<12x96xf32>
    %72 = arith.mulf %70, %71 : vector<12x96xf32>
    %cst_48 = arith.constant 2.000000e+01 : f32
    %73 = vector.broadcast %cst_48 : f32 to vector<12x96xf32>
    %74 = arith.cmpf ogt, %64, %73 : vector<12x96xf32>
    %75 = arith.select %74, %62, %72 : vector<12x96xi1>, vector<12x96xf32>
    %c0_49 = arith.constant 0 : index
    %c0_50 = arith.constant 0 : index
    %76 = vector.load %arg8[%c0_49, %c0_50] : memref<6x12xf32, #tpu.memory_space<vmem>>, vector<6x12xf32>
    %cst_51 = arith.constant dense<0.000000e+00> : vector<6x96xf32>
    %77 = tpu.matmul %76, %75, %cst_51 {dimension_numbers = #tpu.dot_dimension_numbers<[1], [0], [0], [1], [0, 0, 1, 1], [], []>} : vector<6x12xf32>, vector<12x96xf32>, vector<6x96xf32> -> vector<6x96xf32>
    %c0_52 = arith.constant 0 : index
    %c0_53 = arith.constant 0 : index
    %78 = vector.load %arg9[%c0_52, %c0_53] : memref<96x48xf32, #tpu.memory_space<vmem>>, vector<96x48xf32>
    %cst_54 = arith.constant dense<0.000000e+00> : vector<6x48xf32>
    %79 = tpu.matmul %77, %78, %cst_54 {dimension_numbers = #tpu.dot_dimension_numbers<[1], [0], [0], [1], [0, 0, 1, 1], [], []>} : vector<6x96xf32>, vector<96x48xf32>, vector<6x48xf32> -> vector<6x48xf32>
    %80 = vector.extract_strided_slice %79 {offsets = [0, 0], sizes = [4, 48], strides = [1, 1]} : vector<6x48xf32> to vector<4x48xf32>
    %c0_55 = arith.constant 0 : index
    %c0_56 = arith.constant 0 : index
    %c0_57 = arith.constant 0 : index
    %81 = vector.load %arg10[%c0_55, %c0_56, %c0_57] : memref<3x48x32xf32, #tpu.memory_space<vmem>>, vector<1x48x32xf32>
    %82 = vector.shape_cast %81 : vector<1x48x32xf32> to vector<48x32xf32>
    %cst_58 = arith.constant dense<0.000000e+00> : vector<4x32xf32>
    %83 = tpu.matmul %80, %82, %cst_58 {dimension_numbers = #tpu.dot_dimension_numbers<[1], [0], [0], [1], [0, 0, 1, 1], [], []>} : vector<4x48xf32>, vector<48x32xf32>, vector<4x32xf32> -> vector<4x32xf32>
    %84 = vector.extract_strided_slice %79 {offsets = [1, 0], sizes = [4, 48], strides = [1, 1]} : vector<6x48xf32> to vector<4x48xf32>
    %c1_59 = arith.constant 1 : index
    %c0_60 = arith.constant 0 : index
    %c0_61 = arith.constant 0 : index
    %85 = vector.load %arg10[%c1_59, %c0_60, %c0_61] : memref<3x48x32xf32, #tpu.memory_space<vmem>>, vector<1x48x32xf32>
    %86 = vector.shape_cast %85 : vector<1x48x32xf32> to vector<48x32xf32>
    %cst_62 = arith.constant dense<0.000000e+00> : vector<4x32xf32>
    %87 = tpu.matmul %84, %86, %cst_62 {dimension_numbers = #tpu.dot_dimension_numbers<[1], [0], [0], [1], [0, 0, 1, 1], [], []>} : vector<4x48xf32>, vector<48x32xf32>, vector<4x32xf32> -> vector<4x32xf32>
    %88 = arith.addf %83, %87 : vector<4x32xf32>
    %89 = vector.extract_strided_slice %79 {offsets = [2, 0], sizes = [4, 48], strides = [1, 1]} : vector<6x48xf32> to vector<4x48xf32>
    %c2_63 = arith.constant 2 : index
    %c0_64 = arith.constant 0 : index
    %c0_65 = arith.constant 0 : index
    %90 = vector.load %arg10[%c2_63, %c0_64, %c0_65] : memref<3x48x32xf32, #tpu.memory_space<vmem>>, vector<1x48x32xf32>
    %91 = vector.shape_cast %90 : vector<1x48x32xf32> to vector<48x32xf32>
    %cst_66 = arith.constant dense<0.000000e+00> : vector<4x32xf32>
    %92 = tpu.matmul %89, %91, %cst_66 {dimension_numbers = #tpu.dot_dimension_numbers<[1], [0], [0], [1], [0, 0, 1, 1], [], []>} : vector<4x48xf32>, vector<48x32xf32>, vector<4x32xf32> -> vector<4x32xf32>
    %93 = arith.addf %88, %92 : vector<4x32xf32>
    %c0_67 = arith.constant 0 : index
    %c0_68 = arith.constant 0 : index
    %94 = vector.load %arg11[%c0_67, %c0_68] : memref<1x32xf32, #tpu.memory_space<vmem>>, vector<1x32xf32>
    %95 = vector.broadcast %94 : vector<1x32xf32> to vector<4x32xf32>
    %96 = arith.addf %93, %95 : vector<4x32xf32>
    %cst_69 = arith.constant 1.000000e+02 : f32
    %97 = vector.broadcast %cst_69 : f32 to vector<4x32xf32>
    %98 = arith.mulf %97, %96 : vector<4x32xf32>
    %cst_70 = arith.constant 2.000000e+01 : f32
    %99 = vector.broadcast %cst_70 : f32 to vector<4x32xf32>
    %100 = arith.minimumf %98, %99 : vector<4x32xf32>
    %101 = math.exp %100 : vector<4x32xf32>
    %cst_71 = arith.constant 1.000000e+00 : f32
    %102 = vector.broadcast %cst_71 : f32 to vector<4x32xf32>
    %103 = arith.addf %102, %101 : vector<4x32xf32>
    %104 = math.log %103 : vector<4x32xf32>
    %cst_72 = arith.constant 0.00999999977 : f32
    %105 = vector.broadcast %cst_72 : f32 to vector<4x32xf32>
    %106 = arith.mulf %104, %105 : vector<4x32xf32>
    %cst_73 = arith.constant 2.000000e+01 : f32
    %107 = vector.broadcast %cst_73 : f32 to vector<4x32xf32>
    %108 = arith.cmpf ogt, %98, %107 : vector<4x32xf32>
    %109 = arith.select %108, %96, %106 : vector<4x32xi1>, vector<4x32xf32>
    %c0_74 = arith.constant 0 : index
    %c0_75 = arith.constant 0 : index
    %110 = vector.load %arg12[%c0_74, %c0_75] : memref<2x4xf32, #tpu.memory_space<vmem>>, vector<2x4xf32>
    %cst_76 = arith.constant dense<0.000000e+00> : vector<2x32xf32>
    %111 = tpu.matmul %110, %109, %cst_76 {dimension_numbers = #tpu.dot_dimension_numbers<[1], [0], [0], [1], [0, 0, 1, 1], [], []>} : vector<2x4xf32>, vector<4x32xf32>, vector<2x32xf32> -> vector<2x32xf32>
    %c0_77 = arith.constant 0 : index
    %c0_78 = arith.constant 0 : index
    %112 = vector.load %arg13[%c0_77, %c0_78] : memref<32x16xf32, #tpu.memory_space<vmem>>, vector<32x16xf32>
    %cst_79 = arith.constant dense<0.000000e+00> : vector<2x16xf32>
    %113 = tpu.matmul %111, %112, %cst_79 {dimension_numbers = #tpu.dot_dimension_numbers<[1], [0], [0], [1], [0, 0, 1, 1], [], []>} : vector<2x32xf32>, vector<32x16xf32>, vector<2x16xf32> -> vector<2x16xf32>
    %c0_80 = arith.constant 0 : index
    %c0_81 = arith.constant 0 : index
    %114 = vector.load %arg15[%c0_80, %c0_81] : memref<1x32xf32, #tpu.memory_space<vmem>>, vector<1x32xf32>
    %115 = vector.extract_strided_slice %113 {offsets = [0, 0], sizes = [1, 16], strides = [1, 1]} : vector<2x16xf32> to vector<1x16xf32>
    %c0_82 = arith.constant 0 : index
    %c0_83 = arith.constant 0 : index
    %c0_84 = arith.constant 0 : index
    %116 = vector.load %arg14[%c0_82, %c0_83, %c0_84] : memref<2x16x32xf32, #tpu.memory_space<vmem>>, vector<1x16x32xf32>
    %117 = vector.shape_cast %116 : vector<1x16x32xf32> to vector<16x32xf32>
    %cst_85 = arith.constant dense<0.000000e+00> : vector<1x32xf32>
    %118 = tpu.matmul %115, %117, %cst_85 {dimension_numbers = #tpu.dot_dimension_numbers<[1], [0], [0], [1], [0, 0, 1, 1], [], []>} : vector<1x16xf32>, vector<16x32xf32>, vector<1x32xf32> -> vector<1x32xf32>
    %119 = arith.addf %114, %118 : vector<1x32xf32>
    %120 = vector.extract_strided_slice %113 {offsets = [1, 0], sizes = [1, 16], strides = [1, 1]} : vector<2x16xf32> to vector<1x16xf32>
    %c1_86 = arith.constant 1 : index
    %c0_87 = arith.constant 0 : index
    %c0_88 = arith.constant 0 : index
    %121 = vector.load %arg14[%c1_86, %c0_87, %c0_88] : memref<2x16x32xf32, #tpu.memory_space<vmem>>, vector<1x16x32xf32>
    %122 = vector.shape_cast %121 : vector<1x16x32xf32> to vector<16x32xf32>
    %cst_89 = arith.constant dense<0.000000e+00> : vector<1x32xf32>
    %123 = tpu.matmul %120, %122, %cst_89 {dimension_numbers = #tpu.dot_dimension_numbers<[1], [0], [0], [1], [0, 0, 1, 1], [], []>} : vector<1x16xf32>, vector<16x32xf32>, vector<1x32xf32> -> vector<1x32xf32>
    %124 = arith.addf %119, %123 : vector<1x32xf32>
    %cst_90 = arith.constant 1.000000e+02 : f32
    %125 = vector.broadcast %cst_90 : f32 to vector<1x32xf32>
    %126 = arith.mulf %125, %124 : vector<1x32xf32>
    %cst_91 = arith.constant 2.000000e+01 : f32
    %127 = vector.broadcast %cst_91 : f32 to vector<1x32xf32>
    %128 = arith.minimumf %126, %127 : vector<1x32xf32>
    %129 = math.exp %128 : vector<1x32xf32>
    %cst_92 = arith.constant 1.000000e+00 : f32
    %130 = vector.broadcast %cst_92 : f32 to vector<1x32xf32>
    %131 = arith.addf %130, %129 : vector<1x32xf32>
    %132 = math.log %131 : vector<1x32xf32>
    %cst_93 = arith.constant 0.00999999977 : f32
    %133 = vector.broadcast %cst_93 : f32 to vector<1x32xf32>
    %134 = arith.mulf %132, %133 : vector<1x32xf32>
    %cst_94 = arith.constant 2.000000e+01 : f32
    %135 = vector.broadcast %cst_94 : f32 to vector<1x32xf32>
    %136 = arith.cmpf ogt, %126, %135 : vector<1x32xf32>
    %137 = arith.select %136, %124, %134 : vector<1x32xi1>, vector<1x32xf32>
    %c0_95 = arith.constant 0 : index
    %c0_96 = arith.constant 0 : index
    %138 = vector.load %arg16[%c0_95, %c0_96] : memref<32x16xf32, #tpu.memory_space<vmem>>, vector<32x16xf32>
    %cst_97 = arith.constant dense<0.000000e+00> : vector<1x16xf32>
    %139 = tpu.matmul %137, %138, %cst_97 {dimension_numbers = #tpu.dot_dimension_numbers<[1], [0], [0], [1], [0, 0, 1, 1], [], []>} : vector<1x32xf32>, vector<32x16xf32>, vector<1x16xf32> -> vector<1x16xf32>
    %c0_98 = arith.constant 0 : index
    %c0_99 = arith.constant 0 : index
    %140 = vector.load %arg17[%c0_98, %c0_99] : memref<1x16xf32, #tpu.memory_space<vmem>>, vector<1x16xf32>
    %141 = arith.addf %139, %140 : vector<1x16xf32>
    %cst_100 = arith.constant 1.000000e+02 : f32
    %142 = vector.broadcast %cst_100 : f32 to vector<1x16xf32>
    %143 = arith.mulf %142, %141 : vector<1x16xf32>
    %cst_101 = arith.constant 2.000000e+01 : f32
    %144 = vector.broadcast %cst_101 : f32 to vector<1x16xf32>
    %145 = arith.minimumf %143, %144 : vector<1x16xf32>
    %146 = math.exp %145 : vector<1x16xf32>
    %cst_102 = arith.constant 1.000000e+00 : f32
    %147 = vector.broadcast %cst_102 : f32 to vector<1x16xf32>
    %148 = arith.addf %147, %146 : vector<1x16xf32>
    %149 = math.log %148 : vector<1x16xf32>
    %cst_103 = arith.constant 0.00999999977 : f32
    %150 = vector.broadcast %cst_103 : f32 to vector<1x16xf32>
    %151 = arith.mulf %149, %150 : vector<1x16xf32>
    %cst_104 = arith.constant 2.000000e+01 : f32
    %152 = vector.broadcast %cst_104 : f32 to vector<1x16xf32>
    %153 = arith.cmpf ogt, %143, %152 : vector<1x16xf32>
    %154 = arith.select %153, %141, %151 : vector<1x16xi1>, vector<1x16xf32>
    %c0_105 = arith.constant 0 : index
    %c0_106 = arith.constant 0 : index
    %155 = vector.load %arg18[%c0_105, %c0_106] : memref<16x10xf32, #tpu.memory_space<vmem>>, vector<16x10xf32>
    %cst_107 = arith.constant dense<0.000000e+00> : vector<1x10xf32>
    %156 = tpu.matmul %154, %155, %cst_107 {dimension_numbers = #tpu.dot_dimension_numbers<[1], [0], [0], [1], [0, 0, 1, 1], [], []>} : vector<1x16xf32>, vector<16x10xf32>, vector<1x10xf32> -> vector<1x10xf32>
    %c0_108 = arith.constant 0 : index
    %c0_109 = arith.constant 0 : index
    %157 = vector.load %arg19[%c0_108, %c0_109] : memref<1x10xf32, #tpu.memory_space<vmem>>, vector<1x10xf32>
    %158 = arith.addf %156, %157 : vector<1x10xf32>
    %cst_110 = arith.constant dense<0xFF800000> : vector<1xf32>
    %159 = vector.multi_reduction <maximumf>, %158, %cst_110 [1] : vector<1x10xf32> to vector<1xf32>
    %160 = vector.shape_cast %159 : vector<1xf32> to vector<1x1xf32>
    %161 = vector.broadcast %160 : vector<1x1xf32> to vector<1x10xf32>
    %162 = arith.subf %158, %161 : vector<1x10xf32>
    %163 = math.exp %162 : vector<1x10xf32>
    %cst_111 = arith.constant dense<0.000000e+00> : vector<1xf32>
    %164 = vector.multi_reduction <add>, %163, %cst_111 [1] : vector<1x10xf32> to vector<1xf32>
    %165 = vector.shape_cast %164 : vector<1xf32> to vector<1x1xf32>
    %166 = math.log %165 : vector<1x1xf32>
    %167 = arith.addf %166, %160 : vector<1x1xf32>
    %168 = vector.broadcast %167 : vector<1x1xf32> to vector<1x10xf32>
    %169 = arith.subf %158, %168 : vector<1x10xf32>
    %c0_112 = arith.constant 0 : index
    %c0_113 = arith.constant 0 : index
    %c0_114 = arith.constant 0 : index
    %170 = vector.load %arg20[%c0_112, %c0_113, %c0_114] : memref<1x1x10xf32, #tpu.memory_space<vmem>>, vector<1x1x10xf32>
    %171 = vector.shape_cast %170 : vector<1x1x10xf32> to vector<1x10xf32>
    %172 = vector.shape_cast %169 : vector<1x10xf32> to vector<1x1x10xf32>
    tpu.vector_store %arg20[%c0_112, %c0_113, %c0_114], %172 {strides = array<i32>} : memref<1x1x10xf32, #tpu.memory_space<vmem>>, vector<1x1x10xf32>,
    return
  }
  func.func @transform_0(%arg0: i32) -> (i32, i32, i32) {
    %c0_i32 = arith.constant 0 : i32
    %c0_i32_0 = arith.constant 0 : i32
    %c0_i32_1 = arith.constant 0 : i32
    return %arg0, %c0_i32, %c0_i32_0 : i32, i32, i32
  }
  func.func @transform_1(%arg0: i32) -> (i32, i32, i32) {
    %c0_i32 = arith.constant 0 : i32
    %c0_i32_0 = arith.constant 0 : i32
    %c0_i32_1 = arith.constant 0 : i32
    %c0_i32_2 = arith.constant 0 : i32
    return %c0_i32, %c0_i32_0, %c0_i32_1 : i32, i32, i32
  }
  func.func @transform_2(%arg0: i32) -> (i32, i32) {
    %c0_i32 = arith.constant 0 : i32
    %c0_i32_0 = arith.constant 0 : i32
    %c0_i32_1 = arith.constant 0 : i32
    return %c0_i32, %c0_i32_0 : i32, i32
  }
  func.func @transform_3(%arg0: i32) -> (i32, i32) {
    %c0_i32 = arith.constant 0 : i32
    %c0_i32_0 = arith.constant 0 : i32
    %c0_i32_1 = arith.constant 0 : i32
    return %c0_i32, %c0_i32_0 : i32, i32
  }
  func.func @transform_4(%arg0: i32) -> (i32, i32) {
    %c0_i32 = arith.constant 0 : i32
    %c0_i32_0 = arith.constant 0 : i32
    %c0_i32_1 = arith.constant 0 : i32
    return %c0_i32, %c0_i32_0 : i32, i32
  }
  func.func @transform_5(%arg0: i32) -> (i32, i32, i32) {
    %c0_i32 = arith.constant 0 : i32
    %c0_i32_0 = arith.constant 0 : i32
    %c0_i32_1 = arith.constant 0 : i32
    %c0_i32_2 = arith.constant 0 : i32
    return %c0_i32, %c0_i32_0, %c0_i32_1 : i32, i32, i32
  }
  func.func @transform_6(%arg0: i32) -> (i32, i32) {
    %c0_i32 = arith.constant 0 : i32
    %c0_i32_0 = arith.constant 0 : i32
    %c0_i32_1 = arith.constant 0 : i32
    return %c0_i32, %c0_i32_0 : i32, i32
  }
  func.func @transform_7(%arg0: i32) -> (i32, i32) {
    %c0_i32 = arith.constant 0 : i32
    %c0_i32_0 = arith.constant 0 : i32
    %c0_i32_1 = arith.constant 0 : i32
    return %c0_i32, %c0_i32_0 : i32, i32
  }
  func.func @transform_8(%arg0: i32) -> (i32, i32) {
    %c0_i32 = arith.constant 0 : i32
    %c0_i32_0 = arith.constant 0 : i32
    %c0_i32_1 = arith.constant 0 : i32
    return %c0_i32, %c0_i32_0 : i32, i32
  }
  func.func @transform_9(%arg0: i32) -> (i32, i32, i32) {
    %c0_i32 = arith.constant 0 : i32
    %c0_i32_0 = arith.constant 0 : i32
    %c0_i32_1 = arith.constant 0 : i32
    %c0_i32_2 = arith.constant 0 : i32
    return %c0_i32, %c0_i32_0, %c0_i32_1 : i32, i32, i32
  }
  func.func @transform_10(%arg0: i32) -> (i32, i32) {
    %c0_i32 = arith.constant 0 : i32
    %c0_i32_0 = arith.constant 0 : i32
    %c0_i32_1 = arith.constant 0 : i32
    return %c0_i32, %c0_i32_0 : i32, i32
  }
  func.func @transform_11(%arg0: i32) -> (i32, i32) {
    %c0_i32 = arith.constant 0 : i32
    %c0_i32_0 = arith.constant 0 : i32
    %c0_i32_1 = arith.constant 0 : i32
    return %c0_i32, %c0_i32_0 : i32, i32
  }
  func.func @transform_12(%arg0: i32) -> (i32, i32) {
    %c0_i32 = arith.constant 0 : i32
    %c0_i32_0 = arith.constant 0 : i32
    %c0_i32_1 = arith.constant 0 : i32
    return %c0_i32, %c0_i32_0 : i32, i32
  }
  func.func @transform_13(%arg0: i32) -> (i32, i32, i32) {
    %c0_i32 = arith.constant 0 : i32
    %c0_i32_0 = arith.constant 0 : i32
    %c0_i32_1 = arith.constant 0 : i32
    %c0_i32_2 = arith.constant 0 : i32
    return %c0_i32, %c0_i32_0, %c0_i32_1 : i32, i32, i32
  }
  func.func @transform_14(%arg0: i32) -> (i32, i32) {
    %c0_i32 = arith.constant 0 : i32
    %c0_i32_0 = arith.constant 0 : i32
    %c0_i32_1 = arith.constant 0 : i32
    return %c0_i32, %c0_i32_0 : i32, i32
  }
  func.func @transform_15(%arg0: i32) -> (i32, i32) {
    %c0_i32 = arith.constant 0 : i32
    %c0_i32_0 = arith.constant 0 : i32
    %c0_i32_1 = arith.constant 0 : i32
    return %c0_i32, %c0_i32_0 : i32, i32
  }
  func.func @transform_16(%arg0: i32) -> (i32, i32) {
    %c0_i32 = arith.constant 0 : i32
    %c0_i32_0 = arith.constant 0 : i32
    %c0_i32_1 = arith.constant 0 : i32
    return %c0_i32, %c0_i32_0 : i32, i32
  }
  func.func @transform_17(%arg0: i32) -> (i32, i32) {
    %c0_i32 = arith.constant 0 : i32
    %c0_i32_0 = arith.constant 0 : i32
    %c0_i32_1 = arith.constant 0 : i32
    return %c0_i32, %c0_i32_0 : i32, i32
  }
  func.func @transform_18(%arg0: i32) -> (i32, i32) {
    %c0_i32 = arith.constant 0 : i32
    %c0_i32_0 = arith.constant 0 : i32
    %c0_i32_1 = arith.constant 0 : i32
    return %c0_i32, %c0_i32_0 : i32, i32
  }
  func.func @transform_19(%arg0: i32) -> (i32, i32, i32) {
    %c0_i32 = arith.constant 0 : i32
    %c0_i32_0 = arith.constant 0 : i32
    %c0_i32_1 = arith.constant 0 : i32
    return %arg0, %c0_i32, %c0_i32_0 : i32, i32, i32
  }
}

</mosaic_0001>

<bundles_post_ra>
// kernel: smart_simple_net_forward.1
= control target key start
LH: loop header
LB: loop body
LE: loop exit
PB: predicated region body
PF: predicated region fallthrough
CT: control target
= control target key end

     0   :  { %s4343_s0 = inlined_call_operand.vmem [shape: f32[2,32,96], index: 0, kind: input, shape index: {}]   ;;  %s4344_s1 = inlined_call_operand.vmem [shape: f32[5,96,112], index: 1, kind: input, shape index: {}]   ;;  %s4345_s2 = inlined_call_operand.vmem [shape: f32[1,112], index: 2, kind: input, shape index: {}]   ;;  %s4346_s3 = inlined_call_operand.vmem [shape: f32[14,28], index: 3, kind: input, shape index: {}]   ;;  %s4347_s4 = inlined_call_operand.vmem [shape: f32[112,56], index: 4, kind: input, shape index: {}]   ;;  %s4348_s5 = inlined_call_operand.vmem [shape: f32[3,56,96], index: 5, kind: input, shape index: {}]   ;;  %s4349_s6 = inlined_call_operand.vmem [shape: f32[1,96], index: 6, kind: input, shape index: {}]   ;;  %s4350_s7 = inlined_call_operand.vmem [shape: f32[6,12], index: 7, kind: input, shape index: {}]   ;;  %s4351_s8 = inlined_call_operand.vmem [shape: f32[96,48], index: 8, kind: input, shape index: {}]   ;;  %s4352_s9 = inlined_call_operand.vmem [shape: f32[3,48,32], index: 9, kind: input, shape index: {}]   ;;  %s4353_s10 = inlined_call_operand.vmem [shape: f32[1,32], index: 10, kind: input, shape index: {}]   ;;  %s4354_s11 = inlined_call_operand.vmem [shape: f32[2,4], index: 11, kind: input, shape index: {}]   ;;  %s4355_s12 = inlined_call_operand.vmem [shape: f32[32,16], index: 12, kind: input, shape index: {}]   ;;  %s4356_s13 = inlined_call_operand.vmem [shape: f32[2,16,32], index: 13, kind: input, shape index: {}]   ;;  %s4357_s14 = inlined_call_operand.vmem [shape: f32[1,32], index: 14, kind: input, shape index: {}]   ;;  %s4358_s15 = inlined_call_operand.vmem [shape: f32[32,16], index: 15, kind: input, shape index: {}]   ;;  %s4359_s16 = inlined_call_operand.vmem [shape: f32[1,16], index: 16, kind: input, shape index: {}]   ;;  %s4360_s17 = inlined_call_operand.vmem [shape: f32[16,10], index: 17, kind: input, shape index: {}]   ;;  %s4361_s18 = inlined_call_operand.vmem [shape: f32[1,10], index: 18, kind: input, shape index: {}]   ;;  %s4362_s19 = inlined_call_operand.hbm [shape: f32[2,1,10], index: 19, kind: output, shape index: {}]  }
   0x1   :  { %4371 = sst [smem:[#allocation11_spill]] %s4343_s0 }
   0x2   :  { %4372 = sst [smem:[#allocation12_spill]] %s4344_s1 }
   0x3   :  { %4373 = sst [smem:[#allocation13_spill]] %s4345_s2 }
   0x4   :  { %4374 = sst [smem:[#allocation14_spill]] %s4346_s3 }
   0x5   :  { %4375 = sst [smem:[#allocation15_spill]] %s4347_s4 }
   0x6   :  { %4376 = sst [smem:[#allocation16_spill]] %s4348_s5 }
   0x7   :  { %24 = vsyncpa [#allocation3], 0 }
   0x8   :  { %26 = vsyncpa [#allocation3 + $0x1], 0  ;;  %s3642_s0 = smov 0   ;;  %s3644_s30 = smov 0  }
   0x9   :  { %s3646_s20 = smov 0   ;;  %s3648_s21 = smov 0  }
   0xa LB: > { %4377 = sst [smem:[#allocation5_spill]] %s3525_s0  ;;  %s3663_s1 = sadd.s32 4294967295, %s3537_s21   ;;  %s3537_s21 = sphi %s3648_s21, %s4394_s21   ;;  %s3533_s20 = sphi %s3646_s20, %s4396_s20   ;;  %s3529_s30 = sphi %s3644_s30, %s4398_s30   ;;  %s3525_s0 = sphi %s3642_s0, %s4397_s0  }
   0xb   : > { %4378 = sst [smem:[#allocation6_spill]] %s3533_s20  ;;  %s2706_s22 = sadd.s32 4294967294, %s3537_s21  }
   0xc   : > { %4379 = sst [smem:[#allocation7_spill]] %s3537_s21  ;;  %s3667_s2 = sadd.s32 1, %s3537_s21  }
   0xd   : > { %4380 = sst [smem:[#allocation8_spill]] %s3667_s2  ;;  %s443_s23 = sadd.s32 1, %s3533_s20 }
   0xe   : > { %s440_s24 = ssub.s32 %s3537_s21, %s3667_s2  ;;  %p453_p0 = scmp.ne.s32.totalorder %s3533_s20, %s3529_s30 }
   0xf   : > { %p441_p1 = scmp.eq.s32.totalorder %s440_s24, 0  ;;  %p454_p2 = scmp.eq.s32.totalorder %s3663_s1, 1 }
  0x10   : > { %p459_p3 = scmp.ne.s32.totalorder %s3529_s30, %s3525_s0  ;;  %p460_p4 = scmp.eq.s32.totalorder %s2706_s22, 1 }
  0x11   : > { %s3678_s25 = scalar_select %p441_p1, %s3533_s20, %s443_s23  }
  0x12   : > { %p3680_p5 = por %p454_p2, %p453_p0  ;;  %p3684_p6 = por %p460_p4, %p459_p3 }
  0x13   : > { %4381 = sst [smem:[#allocation9_spill]] %s3678_s25  ;;  %p2709_p7 = scmp.ge.s32.totalorder %s3537_s21, 1 }
  0x14   : > { %s4383_s26 = scalar_select %p3684_p6, 1, 0 }
  0x15   : > { %p540_p8 = scmp.lt.s32.totalorder %s3537_s21, 3 }
  0x16   : > { %4384 = sst [smem:[#allocation10_spill]] %s4383_s26 }
  0x17   : > { %p541_p9 = pnand %p2709_p7, %p540_p8 }
  0x18   : > { %s4385_s29 = sld [smem:[#allocation12_spill]] (!%p541_p9)  ;;  %p595_p10 = scmp.lt.s32.totalorder (!%p541_p9), %s3663_s1, 1 }
  0x19   : > { %544 = sbr.rel (%p541_p9) target bundleno = 3034 (0xbda), region = 96  ;;  %s4386_s21 = sld [smem:[#allocation11_spill]] (!%p541_p9) }
  0x1a   : > { %s4387_s24 = sld [smem:[#allocation14_spill]] (!%p541_p9) }
  0x1b   : > { %s4388_s27 = sld [smem:[#allocation13_spill]] (!%p541_p9) }
  0x1c   : > { %s4389_s4 = sld [smem:[#allocation15_spill]] (!%p541_p9) }
  0x1d   : > { %s4390_s5 = sld [smem:[#allocation16_spill]] (!%p541_p9) }
  0x1e   : > { %v2723_v0 = vld [vmem:[%s4385_s29 + $0xb8] sm:$0xff]  ;;  %v2722_v2 = vld [vmem:[%s4385_s29 + $0xb0] sm:$0xff]  ;;  %v2721_v4 = vld [vmem:[%s4385_s29 + $0xa8] sm:$0xff]  ;;  %s596_s26 = scalar_select %p595_p10, %s3663_s1, 1  ;;  %vm633_vm0 = vcmask 1046528   ;;  %vm641_vm1 = vcmask 785408  }
  0x1f   : > { %v615_v1 = vld [vmem:[%s4385_s29 + $0x58] sm:$0xff]  ;;  %3026 = vmatprep.subr.mxu0 %v2723_v0  ;;  %v614_v3 = vld [vmem:[%s4385_s29 + $0x50] sm:$0xff]  ;;  %v613_v5 = vld [vmem:[%s4385_s29 + $0x48] sm:$0xff]  ;;  %vm841_vm2 = vcmask 1045504   ;;  %vm959_vm3 = vcmask 1044480   ;;  %vm1077_vm4 = vcmask 1043456  }
  0x20   : > { %3056 = vmatprep.subr.mxu1 %v615_v1  ;;  %3027 = vmatpush3.msra.mxu0 %v2723_v0  ;;  %v2720_v6 = vld [vmem:[%s4385_s29 + $0xa0] sm:$0xff]  ;;  %v2719_v8 = vld [vmem:[%s4385_s29 + $0x98] sm:$0xff]  ;;  %v2718_v10 = vld [vmem:[%s4385_s29 + $0x90] sm:$0xff]  ;;  %s2838_s0 = sshll.u32 %s596_s26, 5  ;;  %vm1235_vm5 = vcmask 228352   ;;  %vm1334_vm10 = vcmask 916480  }
  0x21   : > { %3057 = vmatpush3.msra.mxu1 %v615_v1  ;;  %3028 = vmatprep.subr.mxu0 %v2722_v2  ;;  %v612_v7 = vld [vmem:[%s4385_s29 + $0x40] sm:$0xff]  ;;  %v611_v9 = vld [vmem:[%s4385_s29 + $0x38] sm:$0xff]  ;;  %v610_v11 = vld [vmem:[%s4385_s29 + $0x30] sm:$0xff]  ;;  %s3739_s20 = scalar_lea.vmem %s4386_s21, %s2838_s0  ;;  %vm1436_vm11 = vcmask 457728   ;;  %vm3540_vm12 = vmmov 0   ;;  %vm1717_vm15 = vcmask 97280  }
  0x22   : > { %3058 = vmatprep.subr.mxu1 %v614_v3  ;;  %3029 = vmatpush3.msra.mxu0 %v2722_v2  ;;  %v2717_v12 = vld [vmem:[%s4385_s29 + $0x88] sm:$0xff]  ;;  %v2716_v14 = vld [vmem:[%s4385_s29 + $0x80] sm:$0xff]  ;;  %v2715_v16 = vld [vmem:[%s4385_s29 + $0x78] sm:$0xff]  ;;  %s593_s0 = sand.u32 1, %s3529_s30   ;;  %s2835_s21 = sshll.u32 %s3663_s1, 4 }
  0x23   : > { %3059 = vmatpush3.msra.mxu1 %v614_v3  ;;  %3030 = vmatprep.subr.mxu0 %v2721_v4  ;;  %v609_v13 = vld [vmem:[%s4385_s29 + $0x28] sm:$0xff]  ;;  %v608_v15 = vld [vmem:[%s4385_s29 + $0x20] sm:$0xff]  ;;  %v607_v17 = vld [vmem:[%s4385_s29 + $0x18] sm:$0xff]  ;;  %s594_s25 = scalar_lea.vmem [#allocation2], %s593_s0  ;;  %s2649_s28 = scalar_lea.hbm %s4362_s19, %s2835_s21 }
  0x24   : > { %3060 = vmatprep.subr.mxu1 %v613_v5  ;;  %3031 = vmatpush3.msra.mxu0 %v2721_v4  ;;  %v3754_v18 = vld [vmem:[%s3739_s20] sm:$0xff]  ;;  %v3757_v19 = vld [vmem:[%s3739_s20 + $0x8] sm:$0xff]  ;;  %v2714_v20 = vld [vmem:[%s4385_s29 + $0x70] sm:$0xff]  ;;  %s2651_s26 = sshll.u32 %s594_s25, 4  ;;  %s2639_s22 = scalar_lea.sflag [#allocation3], %s593_s0  ;;  %s2652_s26 = int_to_ptr.vmem [resolvable:$true] %s2651_s26 }
  0x25   : > { %3061 = vmatpush3.msra.mxu1 %v613_v5  ;;  %3032 = vmatprep.subr.mxu0 %v2720_v6  ;;  %v606_v21 = vld [vmem:[%s4385_s29 + $0x10] sm:$0xff]  ;;  %v634_v23 = vrot.slane %v3754_v18, 1  ;;  %v635_v24 = vrot.slane %v3757_v19, 1  ;;  %v2713_v25 = vld [vmem:[%s4385_s29 + $0x68] sm:$0xff]  ;;  %v2712_v28 = vld [vmem:[%s4385_s29 + $0x60] sm:$0xff]  ;;  %v842_v54 = vrot.slane %v3754_v18, 2 }
  0x26   : > { %3062 = vmatprep.subr.mxu1 %v612_v7  ;;  %3033 = vmatpush3.msra.mxu0 %v2720_v6  ;;  %v3766_v22 = vld [vmem:[%s3739_s20 + $0x10] sm:$0xff]  ;;  %v605_v26 = vld [vmem:[%s4385_s29 + $0x8] sm:$0xff]  ;;  %v604_v29 = vld [vmem:[%s4385_s29] sm:$0xff]  ;;  %v843_v55 = vrot.slane %v3757_v19, 2  ;;  %v960_v61 = vrot.slane %v3754_v18, 3  ;;  %v961_v62 = vrot.slane %v3757_v19, 3 }
  0x27   : > { %3063 = vmatpush3.msra.mxu1 %v612_v7  ;;  %3034 = vmatprep.subr.mxu0 %v2719_v8  ;;  %v637_v27 = vrot.slane %v3766_v22, 1  ;;  %v636_v30 = vsel %vm633_vm0, %v634_v23, %v635_v24  ;;  %v2743_v32 = vld [vmem:[%s4385_s29 + $0x118] sm:$0xff]  ;;  %v2742_v34 = vld [vmem:[%s4385_s29 + $0x110] sm:$0xff]  ;;  %v2741_v36 = vld [vmem:[%s4385_s29 + $0x108] sm:$0xff]  ;;  %v845_v58 = vrot.slane %v3766_v22, 2  ;;  %v963_v0 = vrot.slane %v3766_v22, 3 }
  0x28   : > { %3064 = vmatprep.subr.mxu1 %v611_v9  ;;  %3035 = vmatpush3.msra.mxu0 %v2719_v8  ;;  %v2759_v33 = vld [vmem:[%s4385_s29 + $0x178] sm:$0xff]  ;;  %v2758_v35 = vld [vmem:[%s4385_s29 + $0x170] sm:$0xff]  ;;  %v2757_v37 = vld [vmem:[%s4385_s29 + $0x168] sm:$0xff]  ;;  %v844_v63 = vsel %vm841_vm2, %v842_v54, %v843_v55  ;;  %v962_v6 = vsel %vm959_vm3, %v960_v61, %v961_v62  ;;  %s3477_s23 = scalar_lea.vmem %s2652_s26, 16 }
  0x29   : > { %3065 = vmatpush3.msra.mxu1 %v611_v9  ;;  %3036 = vmatprep.subr.mxu0 %v2718_v10  ;;  %v638_v31 = vsel %vm633_vm0, %v635_v24, %v637_v27  ;;  %v2740_v38 = vld [vmem:[%s4385_s29 + $0x100] sm:$0xff]  ;;  %v2739_v40 = vld [vmem:[%s4385_s29 + $0xf8] sm:$0xff]  ;;  %v2738_v43 = vld [vmem:[%s4385_s29 + $0xf0] sm:$0xff]  ;;  %v846_v1 = vsel %vm841_vm2, %v843_v55, %v845_v58  ;;  %v964_v7 = vsel %vm959_vm3, %v961_v62, %v963_v0  ;;  %v1081_v24 = vrot.slane %v3766_v22, 4  ;;  %p3478_p11 = scmp.ne.s32.totalorder %s2652_s26, %s3477_s23 }
  0x2a   : > { %3066 = vmatprep.subr.mxu1 %v610_v11  ;;  %3037 = vmatpush3.msra.mxu0 %v2718_v10  ;;  %v2756_v39 = vld [vmem:[%s4385_s29 + $0x160] sm:$0xff]  ;;  %v2755_v41 = vld [vmem:[%s4385_s29 + $0x158] sm:$0xff]  ;;  %v2754_v44 = vld [vmem:[%s4385_s29 + $0x150] sm:$0xff]  ;;  %v1078_v10 = vrot.slane %v3754_v18, 4 }
  0x2b   : > { %3067 = vmatpush3.msra.mxu1 %v610_v11  ;;  %3038 = vmatprep.subr.mxu0 %v2717_v12  ;;  %v3824_v42 = vld [vmem:[%s3739_s20 + $0x18] sm:$0xff]  ;;  %v2737_v45 = vld [vmem:[%s4385_s29 + $0xe8] sm:$0xff]  ;;  %v2736_v48 = vld [vmem:[%s4385_s29 + $0xe0] sm:$0xff]  ;;  %v1079_v11 = vrot.slane %v3757_v19, 4  ;;  %p3479_p12 = pnand %p3478_p11, %p3680_p5  ;;  %s3541_s20 = smov [#allocation2]  }
  0x2c   : > { %3068 = vmatprep.subr.mxu1 %v609_v13  ;;  %3039 = vmatpush3.msra.mxu0 %v2717_v12  ;;  %v2753_v46 = vld [vmem:[%s4385_s29 + $0x148] sm:$0xff]  ;;  %v639_v47 = vrot.slane %v3824_v42, 1  ;;  %v2752_v49 = vld [vmem:[%s4385_s29 + $0x140] sm:$0xff]  ;;  %v2735_v50 = vld [vmem:[%s4385_s29 + $0xd8] sm:$0xff]  ;;  %v847_v2 = vrot.slane %v3824_v42, 2  ;;  %v965_v5 = vrot.slane %v3824_v42, 3 }
  0x2d   : > { %3069 = vmatpush3.msra.mxu1 %v609_v13  ;;  %3040 = vmatprep.subr.mxu0 %v2716_v14  ;;  %v2734_v52 = vld [vmem:[%s4385_s29 + $0xd0] sm:$0xff]  ;;  %v2751_v53 = vld [vmem:[%s4385_s29 + $0x138] sm:$0xff]  ;;  %v2733_v56 = vld [vmem:[%s4385_s29 + $0xc8] sm:$0xff]  ;;  %p3480_p13 = pneg %p3479_p12 }
  0x2e   : > { %3070 = vmatprep.subr.mxu1 %v608_v15  ;;  %3041 = vmatpush3.msra.mxu0 %v2716_v14  ;;  %v640_v51 = vsel %vm633_vm0, %v637_v27, %v639_v47  ;;  %v2750_v57 = vld [vmem:[%s4385_s29 + $0x130] sm:$0xff]  ;;  %v2732_v59 = vld [vmem:[%s4385_s29 + $0xc0] sm:$0xff]  ;;  %v2749_v60 = vld [vmem:[%s4385_s29 + $0x128] sm:$0xff]  ;;  %v848_v9 = vsel %vm841_vm2, %v845_v58, %v847_v2  ;;  %v966_v12 = vsel %vm959_vm3, %v963_v0, %v965_v5  ;;  %vm2220_vm3 = vcmask 261120  }
  0x2f   : > { %3071 = vmatpush3.msra.mxu1 %v608_v15  ;;  %3042 = vmatprep.subr.mxu0 %v2715_v16  ;;  %v2748_v3 = vld [vmem:[%s4385_s29 + $0x120] sm:$0xff]  ;;  %v2775_v4 = vld [vmem:[%s4385_s29 + $0x1d8] sm:$0xff]  ;;  %v2774_v8 = vld [vmem:[%s4385_s29 + $0x1d0] sm:$0xff]  ;;  %v1080_v15 = vsel %vm1077_vm4, %v1078_v10, %v1079_v11  ;;  %v1082_v27 = vsel %vm1077_vm4, %v1079_v11, %v1081_v24 }
  0x30   : > { %3072 = vmatprep.subr.mxu1 %v607_v17  ;;  %3043 = vmatpush3.msra.mxu0 %v2715_v16  ;;  %v2773_v13 = vld [vmem:[%s4385_s29 + $0x1c8] sm:$0xff]  ;;  %v2772_v14 = vld [vmem:[%s4385_s29 + $0x1c0] sm:$0xff]  ;;  %v2771_v16 = vld [vmem:[%s4385_s29 + $0x1b8] sm:$0xff] }
  0x31   : > { %3073 = vmatpush3.msra.mxu1 %v607_v17  ;;  %3044 = vmatprep.subr.mxu0 %v2714_v20  ;;  %v2770_v17 = vld [vmem:[%s4385_s29 + $0x1b0] sm:$0xff]  ;;  %v2765_v23 = vld [vmem:[%s4385_s29 + $0x188] sm:$0xff] }
  0x32   : > { %3074 = vmatprep.subr.mxu1 %v606_v21  ;;  %3045 = vmatpush3.msra.mxu0 %v2714_v20  ;;  %v2767_v20 = vld [vmem:[%s4385_s29 + $0x198] sm:$0xff] }
  0x33   : > { %3075 = vmatpush3.msra.mxu1 %v606_v21  ;;  %3046 = vmatprep.subr.mxu0 %v2713_v25  ;;  %v2766_v21 = vld [vmem:[%s4385_s29 + $0x190] sm:$0xff] }
  0x34   : > { %3076 = vmatprep.subr.mxu1 %v605_v26  ;;  %3047 = vmatpush3.msra.mxu0 %v2713_v25  ;;  %v1083_v25 = vrot.slane %v3824_v42, 4 }
  0x35   : > { %3077 = vmatpush3.msra.mxu1 %v605_v26  ;;  %3048 = vmatprep.subr.mxu0 %v2712_v28  ;;  %v2764_v26 = vld [vmem:[%s4385_s29 + $0x180] sm:$0xff] }
  0x36   : > { %3078 = vmatprep.subr.mxu1 %v604_v29  ;;  %3049 = vmatpush3.msra.mxu0 %v2712_v28  ;;  %v1084_v28 = vsel %vm1077_vm4, %v1081_v24, %v1083_v25 }
  0x37   : > { %3050 = vmatprep.mubr.msk.f32.mxu0 %vm641_vm1, %v636_v30  ;;  %3079 = vmatpush3.msra.mxu1 %v604_v29 }
  0x38   : > { %3080 = vmatprep.mubr.msk.f32.mxu1 %vm641_vm1, %v3754_v18  ;;  %3051 = vmatmul.mubr.msk.f32.vlgmr.msra.gmra.mxu0 %vm641_vm1, %v638_v31  ;;  %v2769_v18 = vld [vmem:[%s4385_s29 + $0x1a8] sm:$0xff] }
  0x39   : > { %3081 = vmatmul.mubr.msk.f32.vlgmr.msra.gmra.mxu1 %vm641_vm1, %v3757_v19  ;;  %3086 = vmatprep.subr.mxu0 %v2743_v32  ;;  %v2768_v19 = vld [vmem:[%s4385_s29 + $0x1a0] sm:$0xff] }
  0x3a   : > { %3116 = vmatprep.subr.mxu1 %v2759_v33  ;;  %3087 = vmatpush3.msra.mxu0 %v2743_v32 }
  0x3b   : > { %3117 = vmatpush3.msra.mxu1 %v2759_v33  ;;  %3088 = vmatprep.subr.mxu0 %v2742_v34 }
  0x3c   : > { %3118 = vmatprep.subr.mxu1 %v2758_v35  ;;  %3089 = vmatpush3.msra.mxu0 %v2742_v34 }
  0x3d   : > { %3119 = vmatpush3.msra.mxu1 %v2758_v35  ;;  %3090 = vmatprep.subr.mxu0 %v2741_v36 }
  0x3e   : > { %3120 = vmatprep.subr.mxu1 %v2757_v37  ;;  %3091 = vmatpush3.msra.mxu0 %v2741_v36 }
  0x3f   : > { %3121 = vmatpush3.msra.mxu1 %v2757_v37  ;;  %3092 = vmatprep.subr.mxu0 %v2740_v38 }
  0x40   : > { %3122 = vmatprep.subr.mxu1 %v2756_v39  ;;  %3093 = vmatpush3.msra.mxu0 %v2740_v38 }
  0x41   : > { %3123 = vmatpush3.msra.mxu1 %v2756_v39  ;;  %3094 = vmatprep.subr.mxu0 %v2739_v40 }
  0x42   : > { %3124 = vmatprep.subr.mxu1 %v2755_v41  ;;  %3095 = vmatpush3.msra.mxu0 %v2739_v40 }
  0x43   : > { %3125 = vmatpush3.msra.mxu1 %v2755_v41  ;;  %3096 = vmatprep.subr.mxu0 %v2738_v43 }
  0x44   : > { %3126 = vmatprep.subr.mxu1 %v2754_v44  ;;  %3097 = vmatpush3.msra.mxu0 %v2738_v43 }
  0x45   : > { %3127 = vmatpush3.msra.mxu1 %v2754_v44  ;;  %3098 = vmatprep.subr.mxu0 %v2737_v45 }
  0x46   : > { %3128 = vmatprep.subr.mxu1 %v2753_v46  ;;  %3099 = vmatpush3.msra.mxu0 %v2737_v45 }
  0x47   : > { %3129 = vmatpush3.msra.mxu1 %v2753_v46  ;;  %3100 = vmatprep.subr.mxu0 %v2736_v48 }
  0x48   : > { %3130 = vmatprep.subr.mxu1 %v2752_v49  ;;  %3101 = vmatpush3.msra.mxu0 %v2736_v48 }
  0x49   : > { %3131 = vmatpush3.msra.mxu1 %v2752_v49  ;;  %3102 = vmatprep.subr.mxu0 %v2735_v50 }
  0x4a   : > { %3053 = vmatprep.mubr.msk.f32.mxu0 %vm641_vm1, %v640_v51  ;;  %3103 = vmatpush3.msra.mxu0 %v2735_v50 }
  0x4b   : > { %3083 = vmatprep.mubr.msk.f32.mxu1 %vm641_vm1, %v3766_v22  ;;  %3104 = vmatprep.subr.mxu0 %v2734_v52  ;;  %v1233_v22 = vld [vmem:[%s4387_s24] sm:$0xff] }
  0x4c   : > { %3132 = vmatprep.subr.mxu1 %v2751_v53  ;;  %3054 = vmatmul.mubr.msk.f32.gmra.mxu0 %vm641_vm1, %v639_v47 }
  0x4d   : > { %3084 = vmatmul.mubr.msk.f32.gmra.mxu1 %vm641_vm1, %v3824_v42  ;;  %3105 = vmatpush3.msra.mxu0 %v2734_v52 }
  0x4e   : > { %3133 = vmatpush3.msra.mxu1 %v2751_v53  ;;  %3106 = vmatprep.subr.mxu0 %v2733_v56  ;;  %v2780_v53 = vld [vmem:[%s4388_s27] ss:$0 sm:$0xff] }
  0x4f   : > { %3134 = vmatprep.subr.mxu1 %v2750_v57  ;;  %3107 = vmatpush3.msra.mxu0 %v2733_v56 }
  0x50   : > { %3135 = vmatpush3.msra.mxu1 %v2750_v57  ;;  %3108 = vmatprep.subr.mxu0 %v2732_v59 }
  0x51   : > { %3136 = vmatprep.subr.mxu1 %v2749_v60  ;;  %3109 = vmatpush3.msra.mxu0 %v2732_v59 }
  0x52   : > { %3110 = vmatprep.mubr.msk.f32.mxu0 %vm641_vm1, %v844_v63  ;;  %3137 = vmatpush3.msra.mxu1 %v2749_v60 }
  0x53   : > { %3111 = vmatmul.mubr.msk.f32.vlgmr.msra.gmra.mxu0 %vm641_vm1, %v846_v1  ;;  %3138 = vmatprep.subr.mxu1 %v2748_v3 }
  0x54   : > { %3146 = vmatprep.subr.mxu0 %v2775_v4  ;;  %3139 = vmatpush3.msra.mxu1 %v2748_v3 }
  0x55   : > { %3140 = vmatprep.mubr.msk.f32.mxu1 %vm641_vm1, %v962_v6  ;;  %3147 = vmatpush3.msra.mxu0 %v2775_v4 }
  0x56   : > { %3141 = vmatmul.mubr.msk.f32.vlgmr.msra.gmra.mxu1 %vm641_vm1, %v964_v7  ;;  %3148 = vmatprep.subr.mxu0 %v2774_v8 }
  0x57   : > { %3113 = vmatprep.mubr.msk.f32.mxu0 %vm641_vm1, %v848_v9  ;;  %3149 = vmatpush3.msra.mxu0 %v2774_v8 }
  0x58   : > { %3143 = vmatprep.mubr.msk.f32.mxu1 %vm641_vm1, %v966_v12  ;;  %3114 = vmatmul.mubr.msk.f32.gmra.mxu0 %vm641_vm1, %v847_v2 }
  0x59   : > { %3150 = vmatprep.subr.mxu0 %v2773_v13  ;;  %3170 = vmatprep.mubr.msk.f32.mxu0 %vm641_vm1, %v1080_v15 }
  0x5a   : > { %3151 = vmatpush3.msra.mxu0 %v2773_v13  ;;  %3144 = vmatmul.mubr.msk.f32.gmra.mxu1 %vm641_vm1, %v965_v5 }
  0x5b   : > { %3152 = vmatprep.subr.mxu0 %v2772_v14  ;;  %3184 = vmatprep.mubr.msk.f32.mxu1 %vm1235_vm5, %v1233_v22 }
  0x5c   : > { %3153 = vmatpush3.msra.mxu0 %v2772_v14 }
  0x5d   : > { %3154 = vmatprep.subr.mxu0 %v2771_v16 }
  0x5e   : > { %3155 = vmatpush3.msra.mxu0 %v2771_v16 }
  0x5f   : > { %3156 = vmatprep.subr.mxu0 %v2770_v17 }
  0x60   : > { %3157 = vmatpush3.msra.mxu0 %v2770_v17 }
  0x61   : > { %3158 = vmatprep.subr.mxu0 %v2769_v18 }
  0x62   : > { %3159 = vmatpush3.msra.mxu0 %v2769_v18 }
  0x63   : > { %3160 = vmatprep.subr.mxu0 %v2768_v19 }
  0x64   : > { %3161 = vmatpush3.msra.mxu0 %v2768_v19 }
  0x65   : > { %3162 = vmatprep.subr.mxu0 %v2767_v20 }
  0x66   : > { %3163 = vmatpush3.msra.mxu0 %v2767_v20 }
  0x67   : > { %3164 = vmatprep.subr.mxu0 %v2766_v21 }
  0x68   : > { %3165 = vmatpush3.msra.mxu0 %v2766_v21 }
  0x69   : > { %3166 = vmatprep.subr.mxu0 %v2765_v23 }
  0x6a   : > { %3167 = vmatpush3.msra.mxu0 %v2765_v23 }
  0x6b   : > { %3168 = vmatprep.subr.mxu0 %v2764_v26 }
  0x6c   : > { %3169 = vmatpush3.msra.mxu0 %v2764_v26 }
  0x6d   : > { %3171 = vmatmul.mubr.msk.f32.vlgmr.msra.gmra.mxu0 %vm641_vm1, %v1082_v27 }
  0x6e   : > { %3173 = vmatprep.mubr.msk.f32.mxu0 %vm641_vm1, %v1084_v28 }
  0x71   : > { %3174 = vmatmul.mubr.msk.f32.gmra.mxu0 %vm641_vm1, %v1083_v25 }
  0xf8   : > { %v3052_v29 = vpop.f32.mrf.mxu0 }
  0xf9   : > { %v3082_v31 = vpop.f32.mrf.mxu1 }
  0xfa   : > { %v716_v30 = vpop.f32.mrf.mxu0  ;;  %v815_v40 = vadd.f32 %v3082_v31, %v3052_v29 }
  0xfb   : > { %v809_v33 = vpop.f32.mrf.mxu1 }
  0xfc   : > { %v810_v43 = vadd.f32 %v809_v33, %v716_v30 }
 0x10c   : > { %v3055_v32 = vpop.f32.mrf.mxu0 }
 0x10d   : > { %v3085_v35 = vpop.f32.mrf.mxu1 }
 0x10e   : > { %v726_v34 = vpop.f32.mrf.mxu0  ;;  %v825_v45 = vadd.f32 %v3085_v35, %v3055_v32 }
 0x10f   : > { %v819_v37 = vpop.f32.mrf.mxu1 }
 0x110   : > { %v820_v49 = vadd.f32 %v819_v37, %v726_v34 }
 0x113   : > { %v3112_v36 = vpop.f32.mrf.mxu0 }
 0x114   : > { %v943_v44 = vadd.f32 %v3112_v36, %v815_v40 }
 0x115   : > { %v923_v38 = vpop.f32.mrf.mxu0 }
 0x116   : > { %v3142_v39 = vpop.f32.mrf.mxu1  ;;  %v942_v46 = vadd.f32 %v923_v38, %v810_v43  ;;  %v1333_v43 = vld [vmem:[%s4389_s4 + $0x68] sm:$0xff] }
 0x117   : > { %v1061_v50 = vadd.f32 %v3142_v39, %v943_v44  ;;  %v1332_v44 = vld [vmem:[%s4389_s4 + $0x60] sm:$0xff] }
 0x118   : > { %v3115_v41 = vpop.f32.mrf.mxu0  ;;  %v1041_v42 = vpop.f32.mrf.mxu1 }
 0x119   : > { %v945_v51 = vadd.f32 %v3115_v41, %v825_v45  ;;  %v1060_v54 = vadd.f32 %v1041_v42, %v942_v46  ;;  %v1234_v42 = vld [vmem:[%s4387_s24 + $0x8] sm:$0x3f]  ;;  %v1331_v45 = vld [vmem:[%s4389_s4 + $0x58] sm:$0xff]  ;;  %v1330_v46 = vld [vmem:[%s4389_s4 + $0x50] sm:$0xff] }
 0x11a   : > { %v933_v47 = vpop.f32.mrf.mxu0  ;;  %v3145_v48 = vpop.f32.mrf.mxu1 }
 0x11b   : > { %v944_v55 = vadd.f32 %v933_v47, %v820_v49  ;;  %v1063_v59 = vadd.f32 %v3145_v48, %v945_v51  ;;  %v1329_v47 = vld [vmem:[%s4389_s4 + $0x48] sm:$0xff]  ;;  %v1328_v48 = vld [vmem:[%s4389_s4 + $0x40] sm:$0xff]  ;;  %v1327_v49 = vld [vmem:[%s4389_s4 + $0x38] sm:$0xff] }
 0x11c   : > { %v1051_v57 = vpop.f32.mrf.mxu1  ;;  %v1325_v51 = vld [vmem:[%s4389_s4 + $0x28] sm:$0xff] }
 0x11d   : > { %v1062_v63 = vadd.f32 %v1051_v57, %v944_v55  ;;  %v1321_v55 = vld [vmem:[%s4389_s4 + $0x8] sm:$0xff]  ;;  %v1422_v57 = vld [vmem:[%s4390_s5 + $0x30] sm:$0xff] }
 0x12d   : > { %v3172_v52 = vpop.f32.mrf.mxu0 }
 0x12e   : > { %v1179_v56 = vadd.f32 %v3172_v52, %v1061_v50  ;;  %v1326_v50 = vld [vmem:[%s4389_s4 + $0x30] sm:$0xff]  ;;  %v1324_v52 = vld [vmem:[%s4389_s4 + $0x20] sm:$0xff] }
 0x12f   : > { %v1159_v58 = vpop.f32.mrf.mxu0 }
 0x130   : > { %v1190_v60 = vadd.f32 %v2780_v53, %v1179_v56  ;;  %v1178_v61 = vadd.f32 %v1159_v58, %v1060_v54  ;;  %v1322_v54 = vld [vmem:[%s4389_s4 + $0x10] sm:$0xff]  ;;  %v1320_v56 = vld [vmem:[%s4389_s4] sm:$0xff]  ;;  %v2792_v58 = vld [vmem:[%s4390_s5 + $0x68] sm:$0xff] }
 0x131   : > { %v3175_v62 = vpop.f32.mrf.mxu0  ;;  %3218 = vmatprep.subr.mxu0 %v2792_v58 }
 0x132   : > { %v1194_v0 = vmul.f32 100.0, %v1190_v60  ;;  %v1189_v1 = vadd.f32 %v2780_v53, %v1178_v61  ;;  %v1181_v2 = vadd.f32 %v3175_v62, %v1063_v59  ;;  %3219 = vmatpush3.msra.mxu0 %v2792_v58  ;;  %v2791_v59 = vld [vmem:[%s4390_s5 + $0x60] sm:$0xff]  ;;  %v2789_v61 = vld [vmem:[%s4390_s5 + $0x50] sm:$0xff] }
 0x133   : > { %v1169_v3 = vpop.f32.mrf.mxu0  ;;  %3220 = vmatprep.subr.mxu0 %v2791_v59 }
 0x134   : > { %v1198_v4 = vmin.f32 %v1194_v0, 20.0  ;;  %v1193_v5 = vmul.f32 100.0, %v1189_v1  ;;  %v1192_v6 = vadd.f32 %v2780_v53, %v1181_v2  ;;  %v1180_v7 = vadd.f32 %v1169_v3, %v1062_v63  ;;  %3221 = vmatpush3.msra.mxu0 %v2791_v59  ;;  %v1419_v2 = vld [vmem:[%s4390_s5 + $0x18] sm:$0xff]  ;;  %v1418_v3 = vld [vmem:[%s4390_s5 + $0x10] sm:$0xff] }
 0x135   : > { %vm1226_vm8 = vcmp.gt.f32.partialorder %v1194_v0, 20.0  ;;  %v1421_v0 = vld [vmem:[%s4390_s5 + $0x28] sm:$0xff] }
 0x136   : > { %v1203_v8 = vmul.f32 1.442695, %v1198_v4  ;;  %v1197_v9 = vmin.f32 %v1193_v5, 20.0  ;;  %v1196_v10 = vmul.f32 100.0, %v1192_v6  ;;  %v1191_v11 = vadd.f32 %v2780_v53, %v1180_v7  ;;  %v1323_v53 = vld [vmem:[%s4389_s4 + $0x18] sm:$0xff]  ;;  %v2788_v4 = vld [vmem:[%s4390_s5 + $0x48] sm:$0xff] }
 0x137   : > { %vm1225_vm9 = vcmp.gt.f32.partialorder %v1193_v5, 20.0  ;;  %v1417_v5 = vld [vmem:[%s4390_s5 + $0x8] sm:$0xff]  ;;  %v1416_v7 = vld [vmem:[%s4390_s5] sm:$0xff]  ;;  %s3481_s4 = sshll.u32 %s3541_s20, 4  ;;  %s3482_s4 = int_to_ptr.vmem [resolvable:$false] %s3481_s4 }
 0x138   : > { %3437 = vpow2.f32 %v1203_v8  ;;  %v1201_v12 = vmul.f32 1.442695, %v1197_v9  ;;  %v1200_v13 = vmin.f32 %v1196_v10, 20.0  ;;  %v1195_v14 = vmul.f32 100.0, %v1191_v11  ;;  %v2786_v8 = vld [vmem:[%s4390_s5 + $0x38] sm:$0xff]  ;;  %v2803_v9 = vld [vmem:[%s4390_s5 + $0xa0] sm:$0xff]  ;;  %p3484_p0 = scmp.lt.s32.totalorder %s2652_s26, %s3482_s4 }
 0x139   : > { %vm1228_vm6 = vcmp.gt.f32.partialorder %v1196_v10, 20.0  ;;  %s3483_s1 = scalar_lea.vmem %s3482_s4, 32 }
 0x13a   : > { %3439 = vpow2.f32 %v1201_v12  ;;  %v1207_v15 = vmul.f32 1.442695, %v1200_v13  ;;  %v1199_v16 = vmin.f32 %v1195_v14, 20.0  ;;  %vm1227_vm7 = vcmp.gt.f32.partialorder %v1195_v14, 20.0  ;;  %p3485_p1 = scmp.lt.s32.totalorder %s3483_s1, %s3477_s23 }
 0x13c   : > { %3441 = vpow2.f32 %v1207_v15  ;;  %v1205_v17 = vmul.f32 1.442695, %v1199_v16  ;;  %p3486_p2 = por %p3485_p1, %p3484_p0 }
 0x13e   : > { %3443 = vpow2.f32 %v1205_v17  ;;  %v2802_v17 = vld [vmem:[%s4390_s5 + $0x98] sm:$0xff]  ;;  %p3487_p3 = pnand %p3486_p2, %p3480_p13 }
 0x145   : > { %v3438_v18 = vpop.eup %3437 }
 0x146   : > { %v1210_v19 = vadd.f32 1.0, %v3438_v18 }
 0x147   : > { %v3440_v20 = vpop.eup %3439 }
 0x148   : > { %v1209_v21 = vadd.f32 1.0, %v3440_v20  ;;  %3445 = vlog2.f32 %v1210_v19  ;;  %v2801_v19 = vld [vmem:[%s4390_s5 + $0x90] sm:$0xff]  ;;  %v2800_v20 = vld [vmem:[%s4390_s5 + $0x88] sm:$0xff] }
 0x149   : > { %v3442_v23 = vpop.eup %3441 }
 0x14a   : > { %v1212_v24 = vadd.f32 1.0, %v3442_v23  ;;  %3447 = vlog2.f32 %v1209_v21  ;;  %v2799_v21 = vld [vmem:[%s4390_s5 + $0x80] sm:$0xff]  ;;  %v2798_v23 = vld [vmem:[%s4390_s5 + $0x78] sm:$0xff] }
 0x14b   : > { %v3444_v25 = vpop.eup %3443 }
 0x14c   : > { %3449 = vlog2.f32 %v1212_v24  ;;  %v1211_v26 = vadd.f32 1.0, %v3444_v25  ;;  %v2797_v24 = vld [vmem:[%s4390_s5 + $0x70] sm:$0xff]  ;;  %v3539_v25 = vmov 0.0  }
 0x14e   : > { %3451 = vlog2.f32 %v1211_v26  ;;  %v1805_v26 = vld [vmem:[%s4351_s8 + $0x58] sm:$0xff] }
 0x155   : > { %v3446_v27 = vpop.eup %3445 }
 0x156   : > { %v1216_v30 = vmul.f32 0.6931472, %v3446_v27  ;;  %v1804_v27 = vld [vmem:[%s4351_s8 + $0x50] sm:$0xff] }
 0x157   : > { %v3448_v28 = vpop.eup %3447 }
 0x158   : > { %v1214_v34 = vmul.f32 0.6931472, %v3448_v28  ;;  %v1222_v37 = vmul.f32 0.01, %v1216_v30  ;;  %v1803_v28 = vld [vmem:[%s4351_s8 + $0x48] sm:$0xff]  ;;  %v1800_v30 = vld [vmem:[%s4351_s8 + $0x30] sm:$0xff] }
 0x159   : > { %v3450_v22 = vpop.eup %3449 }
 0x15a   : > { %v1220_v29 = vmul.f32 0.6931472, %v3450_v22  ;;  %v1221_v39 = vmul.f32 0.01, %v1214_v34  ;;  %v1230_v40 = vsel %vm1226_vm8, %v1190_v60, %v1222_v37  ;;  %v2790_v60 = vld [vmem:[%s4390_s5 + $0x58] sm:$0xff]  ;;  %v1802_v22 = vld [vmem:[%s4351_s8 + $0x40] sm:$0xff] }
 0x15b   : > { %v3452_v31 = vpop.eup %3451  ;;  %3222 = vmatprep.subr.mxu0 %v2790_v60  ;;  %v1796_v34 = vld [vmem:[%s4351_s8 + $0x10] sm:$0xff] }
 0x15c   : > { %v1224_v32 = vmul.f32 0.01, %v1220_v29  ;;  %v1218_v33 = vmul.f32 0.6931472, %v3452_v31  ;;  %v1229_v41 = vsel %vm1225_vm9, %v1189_v1, %v1221_v39  ;;  %3223 = vmatpush3.msra.mxu0 %v2790_v60  ;;  %v1420_v1 = vld [vmem:[%s4390_s5 + $0x20] sm:$0xff]  ;;  %v1801_v29 = vld [vmem:[%s4351_s8 + $0x38] sm:$0xff] }
 0x15d   : > { %3224 = vmatprep.subr.mxu0 %v2789_v61  ;;  %v1799_v31 = vld [vmem:[%s4351_s8 + $0x28] sm:$0xff] }
 0x15e   : > { %v1232_v35 = vsel %vm1228_vm6, %v1192_v6, %v1224_v32  ;;  %v1223_v36 = vmul.f32 0.01, %v1218_v33  ;;  %3225 = vmatpush3.msra.mxu0 %v2789_v61  ;;  %v2787_v6 = vld [vmem:[%s4390_s5 + $0x40] sm:$0xff]  ;;  %v1797_v33 = vld [vmem:[%s4351_s8 + $0x18] sm:$0xff] }
 0x15f   : > { %3176 = vmatprep.subr.msk.mxu1 %vm1077_vm4, %v1232_v35  ;;  %3226 = vmatprep.subr.mxu0 %v2788_v4  ;;  %v1798_v32 = vld [vmem:[%s4351_s8 + $0x20] sm:$0xff] }
 0x160   : > { %3177 = vmatpush3.msk.msra.mxu1 %vm1077_vm4, %v1232_v35  ;;  %v1231_v38 = vsel %vm1227_vm7, %v1191_v11, %v1223_v36  ;;  %3227 = vmatpush3.msra.mxu0 %v2788_v4  ;;  %v1795_v35 = vld [vmem:[%s4351_s8 + $0x8] sm:$0xff]  ;;  %v1794_v4 = vld [vmem:[%s4351_s8] sm:$0xff]  ;;  %vm2623_vm7 = vcmask 73728  }
 0x161   : > { %3178 = vmatprep.subr.mxu1 %v1231_v38  ;;  %3228 = vmatprep.subr.mxu0 %v2787_v6 }
 0x162   : > { %3179 = vmatpush3.msra.mxu1 %v1231_v38  ;;  %3229 = vmatpush3.msra.mxu0 %v2787_v6  ;;  %v2814_v6 = vld [vmem:[%s4352_s9 + $0x50] sm:$0xff] }
 0x163   : > { %3180 = vmatprep.subr.mxu1 %v1230_v40  ;;  %3230 = vmatprep.subr.mxu0 %v2786_v8 }
 0x164   : > { %3181 = vmatpush3.msra.mxu1 %v1230_v40  ;;  %3231 = vmatpush3.msra.mxu0 %v2786_v8  ;;  %v2812_v8 = vld [vmem:[%s4352_s9 + $0x40] sm:$0xff] }
 0x165   : > { %3182 = vmatprep.subr.mxu1 %v1229_v41  ;;  %3252 = vmatprep.subr.mxu0 %v2803_v9 }
 0x166   : > { %3183 = vmatpush3.msra.mxu1 %v1229_v41 }
 0x167   : > { %3185 = vmatmul.mubr.msk.f32.vlgmr.msra.gmra.mxu1 %vm1235_vm5, %v1234_v42  ;;  %3187 = vmatprep.subr.mxu1 %v1333_v43  ;;  %v2806_v42 = vld [vmem:[%s4349_s6] ss:$0 sm:$0xff] }
 0x168   : > { %3188 = vmatpush3.msra.mxu1 %v1333_v43 }
 0x169   : > { %3189 = vmatprep.subr.mxu1 %v1332_v44 }
 0x16a   : > { %3190 = vmatpush3.msra.mxu1 %v1332_v44 }
 0x16b   : > { %3191 = vmatprep.subr.mxu1 %v1331_v45 }
 0x16c   : > { %3192 = vmatpush3.msra.mxu1 %v1331_v45 }
 0x16d   : > { %3193 = vmatprep.subr.mxu1 %v1330_v46 }
 0x16e   : > { %3194 = vmatpush3.msra.mxu1 %v1330_v46 }
 0x16f   : > { %3195 = vmatprep.subr.mxu1 %v1329_v47 }
 0x170   : > { %3196 = vmatpush3.msra.mxu1 %v1329_v47 }
 0x171   : > { %3197 = vmatprep.subr.mxu1 %v1328_v48 }
 0x172   : > { %3198 = vmatpush3.msra.mxu1 %v1328_v48 }
 0x173   : > { %3199 = vmatprep.subr.mxu1 %v1327_v49 }
 0x174   : > { %3200 = vmatpush3.msra.mxu1 %v1327_v49 }
 0x175   : > { %3201 = vmatprep.subr.mxu1 %v1326_v50 }
 0x176   : > { %3202 = vmatpush3.msra.mxu1 %v1326_v50 }
 0x177   : > { %3203 = vmatprep.subr.mxu1 %v1325_v51 }
 0x178   : > { %3204 = vmatpush3.msra.mxu1 %v1325_v51 }
 0x179   : > { %3205 = vmatprep.subr.mxu1 %v1324_v52 }
 0x17a   : > { %3206 = vmatpush3.msra.mxu1 %v1324_v52 }
 0x17b   : > { %3207 = vmatprep.subr.mxu1 %v1323_v53 }
 0x17c   : > { %3208 = vmatpush3.msra.mxu1 %v1323_v53 }
 0x17d   : > { %3209 = vmatprep.subr.mxu1 %v1322_v54 }
 0x17e   : > { %3210 = vmatpush3.msra.mxu1 %v1322_v54 }
 0x17f   : > { %3211 = vmatprep.subr.mxu1 %v1321_v55 }
 0x180   : > { %3212 = vmatpush3.msra.mxu1 %v1321_v55 }
 0x181   : > { %3213 = vmatprep.subr.mxu1 %v1320_v56 }
 0x182   : > { %3214 = vmatpush3.msra.mxu1 %v1320_v56 }
 0x183   : > { %3235 = vmatprep.subr.mxu1 %v1422_v57 }
 0x227   : > { %v3186_v62 = vpop.f32.mrf.mxu1 }
 0x229   : > { %v1311_v63 = vpop.f32.mrf.mxu1 }
 0x22a   : > { %3215 = vmatprep.mubr.msk.f32.mxu1 %vm1334_vm10, %v1311_v63 }
 0x22b   : > { %3216 = vmatmul.mubr.msk.f32.vlgmr.msra.gmra.mxu1 %vm1334_vm10, %v3186_v62 }
 0x22c   : > { %3236 = vmatpush3.msra.mxu1 %v1422_v57 }
 0x22d   : > { %3237 = vmatprep.subr.mxu1 %v1421_v0 }
 0x22e   : > { %3238 = vmatpush3.msra.mxu1 %v1421_v0 }
 0x22f   : > { %3239 = vmatprep.subr.mxu1 %v1420_v1 }
 0x230   : > { %3240 = vmatpush3.msra.mxu1 %v1420_v1 }
 0x231   : > { %3241 = vmatprep.subr.mxu1 %v1419_v2 }
 0x232   : > { %3242 = vmatpush3.msra.mxu1 %v1419_v2  ;;  %v1716_v2 = vld [vmem:[%s4350_s7] sm:$0x3f] }
 0x233   : > { %3243 = vmatprep.subr.mxu1 %v1418_v3 }
 0x234   : > { %3244 = vmatpush3.msra.mxu1 %v1418_v3 }
 0x235   : > { %3245 = vmatprep.subr.mxu1 %v1417_v5 }
 0x236   : > { %3246 = vmatpush3.msra.mxu1 %v1417_v5  ;;  %v2815_v5 = vld [vmem:[%s4352_s9 + $0x58] sm:$0xff] }
 0x237   : > { %3247 = vmatprep.subr.mxu1 %v1416_v7 }
 0x238   : > { %3248 = vmatpush3.msra.mxu1 %v1416_v7  ;;  %v2813_v7 = vld [vmem:[%s4352_s9 + $0x48] sm:$0xff] }
 0x239   : > { %3269 = vmatprep.subr.mxu1 %v3539_v25 }
 0x2eb   : > { %v3217_v10 = vpop.f32.mrf.mxu1 }
 0x2ec   : > { %v1434_v12 = vrot.slane %v3217_v10, 1  ;;  %v1604_v15 = vrot.slane %v3217_v10, 2 }
 0x2ed   : > { %v1407_v11 = vpop.f32.mrf.mxu1 }
 0x2ee   : > { %v1433_v13 = vrot.slane %v1407_v11, 1  ;;  %v1603_v14 = vrot.slane %v1407_v11, 2  ;;  %3249 = vmatprep.mubr.msk.f32.mxu1 %vm1436_vm11, %v1407_v11 }
 0x2ef   : > { %3250 = vmatmul.mubr.msk.f32.vlgmr.msra.gmra.mxu1 %vm1436_vm11, %v3217_v10  ;;  %v2823_v10 = vld [vmem:[%s4352_s9 + $0x88] sm:$0xff] }
 0x2f0   : > { %v1435_v16 = vsel %vm633_vm0, %v1433_v13, %v1434_v12  ;;  %v1605_v18 = vsel %vm841_vm2, %v1603_v14, %v1604_v15  ;;  %3273 = vmatprep.mubr.msk.f32.mxu1 %vm3540_vm12, %v3539_v25  ;;  %v2821_v14 = vld [vmem:[%s4352_s9 + $0x78] sm:$0xff]  ;;  %vm1894_vm0 = vcmask 392192   ;;  %vm2139_vm2 = vcmask 31744  }
 0x2f1   : > { %3232 = vmatprep.mubr.msk.f32.mxu0 %vm1436_vm11, %v1435_v16  ;;  %v2819_v16 = vld [vmem:[%s4352_s9 + $0x68] sm:$0xff] }
 0x2f2   : > { %3233 = vmatmul.mubr.msk.f32.vlgmr.msra.gmra.mxu0 %vm1436_vm11, %v1434_v12  ;;  %v2822_v12 = vld [vmem:[%s4352_s9 + $0x80] sm:$0xff] }
 0x2f3   : > { %3253 = vmatpush3.msra.mxu0 %v2803_v9  ;;  %3266 = vmatprep.mubr.msk.f32.mxu0 %vm1436_vm11, %v1605_v18  ;;  %v2811_v9 = vld [vmem:[%s4352_s9 + $0x38] sm:$0xff]  ;;  %v2818_v18 = vld [vmem:[%s4352_s9 + $0x60] sm:$0xff] }
 0x2f4   : > { %3254 = vmatprep.subr.mxu0 %v2802_v17 }
 0x2f5   : > { %3255 = vmatpush3.msra.mxu0 %v2802_v17  ;;  %v2810_v17 = vld [vmem:[%s4352_s9 + $0x30] sm:$0xff] }
 0x2f6   : > { %3256 = vmatprep.subr.mxu0 %v2801_v19 }
 0x2f7   : > { %3257 = vmatpush3.msra.mxu0 %v2801_v19 }
 0x2f8   : > { %3258 = vmatprep.subr.mxu0 %v2800_v20 }
 0x2f9   : > { %3259 = vmatpush3.msra.mxu0 %v2800_v20 }
 0x2fa   : > { %3260 = vmatprep.subr.mxu0 %v2799_v21 }
 0x2fb   : > { %3261 = vmatpush3.msra.mxu0 %v2799_v21 }
 0x2fc   : > { %3262 = vmatprep.subr.mxu0 %v2798_v23 }
 0x2fd   : > { %3263 = vmatpush3.msra.mxu0 %v2798_v23  ;;  %v1884_v23 = vld [vmem:[%s4352_s9 + $0x28] sm:$0xff] }
 0x2fe   : > { %3264 = vmatprep.subr.mxu0 %v2797_v24 }
 0x2ff   : > { %3265 = vmatpush3.msra.mxu0 %v2797_v24 }
 0x300   : > { %3267 = vmatmul.mubr.msk.f32.vlgmr.msra.gmra.mxu0 %vm1436_vm11, %v1604_v15  ;;  %3276 = vmatprep.subr.mxu0 %v3539_v25  ;;  %v2820_v15 = vld [vmem:[%s4352_s9 + $0x70] sm:$0xff] }
 0x301   : > { %3300 = vmatprep.mubr.msk.f32.mxu0 %vm3540_vm12, %v3539_v25  ;;  %3277 = vmatpush3.msra.mxu0 %v1805_v26  ;;  %v1883_v26 = vld [vmem:[%s4352_s9 + $0x20] sm:$0xff] }
 0x302   : > { %3278 = vmatprep.subr.mxu0 %v3539_v25 }
 0x303   : > { %3279 = vmatpush3.msra.mxu0 %v1804_v27  ;;  %v1882_v27 = vld [vmem:[%s4352_s9 + $0x18] sm:$0xff] }
 0x304   : > { %3280 = vmatprep.subr.mxu0 %v3539_v25 }
 0x305   : > { %3281 = vmatpush3.msra.mxu0 %v1803_v28  ;;  %v1881_v28 = vld [vmem:[%s4352_s9 + $0x10] sm:$0xff] }
 0x306   : > { %3282 = vmatprep.subr.mxu0 %v3539_v25 }
 0x307   : > { %3283 = vmatpush3.msra.mxu0 %v1802_v22  ;;  %v1880_v22 = vld [vmem:[%s4352_s9 + $0x8] sm:$0xff] }
 0x308   : > { %3284 = vmatprep.subr.mxu0 %v3539_v25 }
 0x309   : > { %3285 = vmatpush3.msra.mxu0 %v1801_v29  ;;  %v1879_v29 = vld [vmem:[%s4352_s9] sm:$0xff] }
 0x30a   : > { %3286 = vmatprep.subr.mxu0 %v3539_v25 }
 0x30b   : > { %3287 = vmatpush3.msra.mxu0 %v1800_v30 }
 0x30c   : > { %3288 = vmatprep.subr.mxu0 %v3539_v25 }
 0x30d   : > { %3289 = vmatpush3.msra.mxu0 %v1799_v31 }
 0x30e   : > { %3290 = vmatprep.subr.mxu0 %v3539_v25 }
 0x30f   : > { %3291 = vmatpush3.msra.mxu0 %v1798_v32 }
 0x310   : > { %3292 = vmatprep.subr.mxu0 %v3539_v25 }
 0x311   : > { %3293 = vmatpush3.msra.mxu0 %v1797_v33 }
 0x312   : > { %3294 = vmatprep.subr.mxu0 %v3539_v25 }
 0x313   : > { %3295 = vmatpush3.msra.mxu0 %v1796_v34 }
 0x314   : > { %3296 = vmatprep.subr.mxu0 %v3539_v25 }
 0x315   : > { %3297 = vmatpush3.msra.mxu0 %v1795_v35 }
 0x316   : > { %3298 = vmatprep.subr.mxu0 %v3539_v25 }
 0x317   : > { %3299 = vmatpush3.msra.mxu0 %v1794_v4 }
 0x318   : > { %3333 = vmatprep.subr.mxu0 %v3539_v25 }
 0x3af   : > { %v3251_v37 = vpop.f32.mrf.mxu1 }
 0x3b1   : > { %v1586_v40 = vpop.f32.mrf.mxu1 }
 0x3b2   : > { %v3234_v36 = vpop.f32.mrf.mxu0 }
 0x3b3   : > { %v1592_v39 = vadd.f32 %v3251_v37, %v3234_v36  ;;  %v2825_v36 = vld [vmem:[%s4353_s10] ss:$0 sm:$0xff] }
 0x3b4   : > { %v1507_v38 = vpop.f32.mrf.mxu0 }
 0x3b5   : > { %v1587_v43 = vadd.f32 %v1586_v40, %v1507_v38 }
 0x3c0   : > { %v3268_v41 = vpop.f32.mrf.mxu0 }
 0x3c1   : > { %v1686_v44 = vadd.f32 %v3268_v41, %v1592_v39 }
 0x3c2   : > { %v1676_v45 = vpop.f32.mrf.mxu0 }
 0x3c3   : > { %v1695_v46 = vadd.f32 %v2806_v42, %v1686_v44  ;;  %v1685_v47 = vadd.f32 %v1676_v45, %v1587_v43 }
 0x3c5   : > { %v1697_v48 = vmul.f32 100.0, %v1695_v46  ;;  %v1694_v49 = vadd.f32 %v2806_v42, %v1685_v47 }
 0x3c7   : > { %v1699_v50 = vmin.f32 %v1697_v48, 20.0  ;;  %v1696_v51 = vmul.f32 100.0, %v1694_v49  ;;  %vm1713_vm13 = vcmp.gt.f32.partialorder %v1697_v48, 20.0  ;;  %v2138_v48 = vld [vmem:[%s4354_s11] sm:$0x3] }
 0x3c9   : > { %v1702_v52 = vmul.f32 1.442695, %v1699_v50  ;;  %v1698_v53 = vmin.f32 %v1696_v51, 20.0  ;;  %vm1712_vm14 = vcmp.gt.f32.partialorder %v1696_v51, 20.0  ;;  %v2219_v50 = vld [vmem:[%s4355_s12 + $0x18] sm:$0xff]  ;;  %v2218_v51 = vld [vmem:[%s4355_s12 + $0x10] sm:$0xff] }
 0x3cb   : > { %3453 = vpow2.f32 %v1702_v52  ;;  %v1700_v54 = vmul.f32 1.442695, %v1698_v53  ;;  %v2217_v52 = vld [vmem:[%s4355_s12 + $0x8] sm:$0xff]  ;;  %v2216_v53 = vld [vmem:[%s4355_s12] sm:$0xff] }
 0x3cd   : > { %3455 = vpow2.f32 %v1700_v54  ;;  %v2296_v54 = vld [vmem:[%s4356_s13 + $0x8] sm:$0xff] }
 0x3d8   : > { %v3454_v55 = vpop.eup %3453 }
 0x3d9   : > { %v1705_v56 = vadd.f32 1.0, %v3454_v55 }
 0x3da   : > { %v3456_v57 = vpop.eup %3455 }
 0x3db   : > { %3457 = vlog2.f32 %v1705_v56  ;;  %v1704_v58 = vadd.f32 1.0, %v3456_v57  ;;  %v2295_v57 = vld [vmem:[%s4356_s13] sm:$0xff] }
 0x3dd   : > { %3459 = vlog2.f32 %v1704_v58  ;;  %v2831_v58 = vld [vmem:[%s4356_s13 + $0x18] sm:$0xff] }
 0x3e8   : > { %v3458_v59 = vpop.eup %3457 }
 0x3e9   : > { %v1709_v60 = vmul.f32 0.6931472, %v3458_v59  ;;  %v2830_v59 = vld [vmem:[%s4356_s13 + $0x10] sm:$0xff] }
 0x3ea   : > { %v3460_v61 = vpop.eup %3459 }
 0x3eb   : > { %v1711_v62 = vmul.f32 0.01, %v1709_v60  ;;  %v1707_v63 = vmul.f32 0.6931472, %v3460_v61 }
 0x3ed   : > { %v1715_v0 = vsel %vm1713_vm13, %v1695_v46, %v1711_v62  ;;  %v1710_v1 = vmul.f32 0.01, %v1707_v63  ;;  %v2462_v63 = vld [vmem:[%s4358_s15 + $0x18] sm:$0xff] }
 0x3ee   : > { %3270 = vmatpush3.msk.msra.mxu1 %vm1077_vm4, %v1715_v0  ;;  %v2461_v0 = vld [vmem:[%s4358_s15 + $0x10] sm:$0xff] }
 0x3ef   : > { %3271 = vmatprep.subr.mxu1 %v3539_v25  ;;  %v1714_v3 = vsel %vm1712_vm14, %v1694_v49, %v1710_v1  ;;  %v2460_v1 = vld [vmem:[%s4358_s15 + $0x8] sm:$0xff] }
 0x3f0   : > { %3272 = vmatpush3.msra.mxu1 %v1714_v3  ;;  %v2294_v3 = vld [vmem:[%s4357_s14] sm:$0x1] }
 0x3f1   : > { %3274 = vmatmul.mubr.msk.f32.vlgmr.msra.gmra.mxu1 %vm1717_vm15, %v1716_v2  ;;  %3303 = vmatprep.subr.mxu1 %v3539_v25  ;;  %v2459_v2 = vld [vmem:[%s4358_s15] sm:$0xff] }
 0x3f2   : > { %3315 = vmatprep.mubr.msk.f32.mxu1 %vm3540_vm12, %v3539_v25  ;;  %3304 = vmatpush3.msra.mxu1 %v2815_v5 }
 0x3f3   : > { %3305 = vmatprep.subr.mxu1 %v3539_v25 }
 0x3f4   : > { %3306 = vmatpush3.msra.mxu1 %v2814_v6 }
 0x3f5   : > { %3307 = vmatprep.subr.mxu1 %v3539_v25 }
 0x3f6   : > { %3308 = vmatpush3.msra.mxu1 %v2813_v7 }
 0x3f7   : > { %3309 = vmatprep.subr.mxu1 %v3539_v25 }
 0x3f8   : > { %3310 = vmatpush3.msra.mxu1 %v2812_v8 }
 0x3f9   : > { %3311 = vmatprep.subr.mxu1 %v3539_v25 }
 0x3fa   : > { %3312 = vmatpush3.msra.mxu1 %v2811_v9 }
 0x3fb   : > { %3313 = vmatprep.subr.mxu1 %v3539_v25 }
 0x3fc   : > { %3314 = vmatpush3.msra.mxu1 %v2810_v17 }
 0x3fd   : > { %3318 = vmatprep.subr.mxu1 %v3539_v25 }
 0x4b1   : > { %v1790_v11 = vpop.f32.mrf.mxu1 }
 0x4b2   : > { %3301 = vmatmul.mubr.msk.f32.vlgmr.msra.gmra.mxu0 %vm641_vm1, %v1790_v11 }
 0x4b3   : > { %v3275_v13 = vpop.f32.mrf.mxu1  ;;  %3334 = vmatpush3.msra.mxu0 %v2823_v10  ;;  %3345 = vmatprep.mubr.msk.f32.mxu0 %vm3540_vm12, %v3539_v25 }
 0x4b4   : > { %3335 = vmatprep.subr.mxu0 %v3539_v25 }
 0x4b5   : > { %3336 = vmatpush3.msra.mxu0 %v2822_v12 }
 0x4b6   : > { %3337 = vmatprep.subr.mxu0 %v3539_v25 }
 0x4b7   : > { %3338 = vmatpush3.msra.mxu0 %v2821_v14 }
 0x4b8   : > { %3339 = vmatprep.subr.mxu0 %v3539_v25 }
 0x4b9   : > { %3340 = vmatpush3.msra.mxu0 %v2820_v15 }
 0x4ba   : > { %3341 = vmatprep.subr.mxu0 %v3539_v25 }
 0x4bb   : > { %3342 = vmatpush3.msra.mxu0 %v2819_v16 }
 0x4bc   : > { %3343 = vmatprep.subr.mxu0 %v3539_v25 }
 0x4bd   : > { %3344 = vmatpush3.msra.mxu0 %v2818_v18 }
 0x4be   : > { %3364 = vmatprep.subr.mxu0 %v3539_v25 }
 0x572   : > { %v1875_v19 = vpop.f32.mrf.mxu0 }
 0x573   : > { %v1893_v20 = vrot.slane %v1875_v19, 1  ;;  %v2046_v21 = vrot.slane %v1875_v19, 2 }
 0x574   : > { %v3302_v24 = vpop.f32.mrf.mxu0 }
 0x575   : > { %3316 = vmatmul.mubr.msk.f32.vlgmr.msra.gmra.mxu1 %vm1894_vm0, %v1893_v20  ;;  %3346 = vmatmul.mubr.msk.f32.vlgmr.msra.gmra.mxu0 %vm1894_vm0, %v2046_v21  ;;  %v2547_v20 = vld [vmem:[%s4360_s17] sm:$0xff] }
 0x576   : > { %3319 = vmatpush3.msra.mxu1 %v1884_v23  ;;  %3330 = vmatprep.mubr.msk.f32.mxu1 %vm3540_vm12, %v3539_v25  ;;  %v2463_v21 = vld [vmem:[%s4359_s16] sm:$0x1] }
 0x577   : > { %3320 = vmatprep.subr.mxu1 %v3539_v25  ;;  %3368 = vmatprep.mubr.msk.f32.mxu0 %vm3540_vm12, %v3539_v25 }
 0x578   : > { %3321 = vmatpush3.msra.mxu1 %v1883_v26  ;;  %3365 = vmatpush3.msra.mxu0 %v2296_v54 }
 0x579   : > { %3322 = vmatprep.subr.mxu1 %v3539_v25  ;;  %3366 = vmatprep.subr.mxu0 %v3539_v25 }
 0x57a   : > { %3323 = vmatpush3.msra.mxu1 %v1882_v27  ;;  %3367 = vmatpush3.msra.mxu0 %v2295_v57 }
 0x57b   : > { %3324 = vmatprep.subr.mxu1 %v3539_v25  ;;  %3378 = vmatprep.subr.mxu0 %v3539_v25 }
 0x57c   : > { %3325 = vmatpush3.msra.mxu1 %v1881_v28 }
 0x57d   : > { %3326 = vmatprep.subr.mxu1 %v3539_v25 }
 0x57e   : > { %3327 = vmatpush3.msra.mxu1 %v1880_v22 }
 0x57f   : > { %3328 = vmatprep.subr.mxu1 %v3539_v25 }
 0x580   : > { %3329 = vmatpush3.msra.mxu1 %v1879_v29 }
 0x581   : > { %3331 = vmatmul.mubr.msk.f32.vlgmr.msra.gmra.mxu1 %vm1894_vm0, %v1875_v19  ;;  %3348 = vmatprep.subr.mxu1 %v3539_v25  ;;  %v2548_v19 = vld [vmem:[%s4360_s17 + $0x8] sm:$0xff] }
 0x582   : > { %3350 = vmatprep.mubr.msk.f32.mxu1 %vm3540_vm12, %v3539_v25 }
 0x635   : > { %v1963_v30 = vpop.f32.mrf.mxu1  ;;  %v2115_v31 = vpop.f32.mrf.mxu0 }
 0x637   : > { %v3317_v32 = vpop.f32.mrf.mxu1  ;;  %v3347_v33 = vpop.f32.mrf.mxu0 }
 0x641   : > { %v2035_v34 = vpop.f32.mrf.mxu1 }
 0x642   : > { %v2036_v35 = vadd.f32 %v2035_v34, %v1963_v30  ;;  %v2549_v34 = vld [vmem:[%s4361_s18] sm:$0x1] }
 0x643   : > { %v3332_v37 = vpop.f32.mrf.mxu1 }
 0x644   : > { %v2119_v38 = vadd.f32 %v2115_v31, %v2036_v35 }
 0x646   : > { %v2127_v39 = vadd.f32 %v2825_v36, %v2119_v38 }
 0x648   : > { %v2128_v40 = vmul.f32 100.0, %v2127_v39 }
 0x64a   : > { %v2129_v41 = vmin.f32 %v2128_v40, 20.0  ;;  %vm2136_vm1 = vcmp.gt.f32.partialorder %v2128_v40, 20.0 }
 0x64c   : > { %v2130_v42 = vmul.f32 1.442695, %v2129_v41 }
 0x64e   : > { %3461 = vpow2.f32 %v2130_v42 }
 0x65b   : > { %v3462_v43 = vpop.eup %3461 }
 0x65c   : > { %v2132_v44 = vadd.f32 1.0, %v3462_v43 }
 0x65e   : > { %3463 = vlog2.f32 %v2132_v44 }
 0x66b   : > { %v3464_v45 = vpop.eup %3463 }
 0x66c   : > { %v2134_v46 = vmul.f32 0.6931472, %v3464_v45 }
 0x66e   : > { %v2135_v47 = vmul.f32 0.01, %v2134_v46 }
 0x670   : > { %v2137_v49 = vsel %vm2136_vm1, %v2127_v39, %v2135_v47 }
 0x671   : > { %3349 = vmatpush3.msk.msra.mxu1 %vm1077_vm4, %v2137_v49  ;;  %vm2297_vm4 = vcmask 130048  }
 0x672   : > { %3351 = vmatmul.mubr.msk.f32.vlgmr.msra.gmra.mxu1 %vm2139_vm2, %v2138_v48  ;;  %3353 = vmatprep.subr.mxu1 %v3539_v25 }
 0x673   : > { %3354 = vmatpush3.msra.mxu1 %v2219_v50  ;;  %3361 = vmatprep.mubr.msk.f32.mxu1 %vm3540_vm12, %v3539_v25 }
 0x674   : > { %3355 = vmatprep.subr.mxu1 %v3539_v25 }
 0x675   : > { %3356 = vmatpush3.msra.mxu1 %v2218_v51 }
 0x676   : > { %3357 = vmatprep.subr.mxu1 %v3539_v25 }
 0x677   : > { %3358 = vmatpush3.msra.mxu1 %v2217_v52 }
 0x678   : > { %3359 = vmatprep.subr.mxu1 %v3539_v25 }
 0x679   : > { %3360 = vmatpush3.msra.mxu1 %v2216_v53 }
 0x67a   : > { %3371 = vmatprep.subr.mxu1 %v3539_v25 }
 0x732   : > { %v2212_v55 = vpop.f32.mrf.mxu1 }
 0x733   : > { %3362 = vmatmul.mubr.msk.f32.vlgmr.msra.gmra.mxu1 %vm2220_vm3, %v2212_v55 }
 0x734   : > { %v3352_v56 = vpop.f32.mrf.mxu1  ;;  %3375 = vmatprep.mubr.msk.f32.mxu1 %vm3540_vm12, %v3539_v25  ;;  %3372 = vmatpush3.msra.mxu1 %v2831_v58 }
 0x735   : > { %3373 = vmatprep.subr.mxu1 %v3539_v25 }
 0x736   : > { %3374 = vmatpush3.msra.mxu1 %v2830_v59 }
 0x737   : > { %3389 = vmatprep.subr.mxu1 %v3539_v25 }
 0x7f3   : > { %v2290_v60 = vpop.f32.mrf.mxu1 }
 0x7f4   : > { %v2375_v61 = vrot.slane %v2290_v60, 1  ;;  %3369 = vmatmul.mubr.msk.f32.vlgmr.msra.gmra.mxu0 %vm2297_vm4, %v2290_v60 }
 0x7f5   : > { %v3363_v62 = vpop.f32.mrf.mxu1  ;;  %3386 = vmatprep.mubr.msk.f32.mxu0 %vm3540_vm12, %v3539_v25  ;;  %3379 = vmatpush3.msra.mxu0 %v2462_v63 }
 0x7f6   : > { %3376 = vmatmul.mubr.msk.f32.vlgmr.msra.gmra.mxu1 %vm2297_vm4, %v2375_v61  ;;  %3380 = vmatprep.subr.mxu0 %v3539_v25 }
 0x7f7   : > { %3393 = vmatprep.mubr.msk.f32.mxu1 %vm3540_vm12, %v3539_v25  ;;  %3381 = vmatpush3.msra.mxu0 %v2461_v0 }
 0x7f8   : > { %3382 = vmatprep.subr.mxu0 %v3539_v25  ;;  %3390 = vmatpush3.msra.mxu1 %v2548_v19 }
 0x7f9   : > { %3383 = vmatpush3.msra.mxu0 %v2460_v1  ;;  %3391 = vmatprep.subr.mxu1 %v3539_v25 }
 0x7fa   : > { %3384 = vmatprep.subr.mxu0 %v3539_v25  ;;  %3392 = vmatpush3.msra.mxu1 %v2547_v20 }
 0x7fb   : > { %3385 = vmatpush3.msra.mxu0 %v2459_v2 }
 0x8b4   : > { %v2367_v4 = vpop.f32.mrf.mxu0 }
 0x8b5   : > { %v2371_v5 = vadd.f32 %v2367_v4, %v2294_v3 }
 0x8b6   : > { %v2444_v6 = vpop.f32.mrf.mxu1  ;;  %v3370_v7 = vpop.f32.mrf.mxu0 }
 0x8b7   : > { %v2448_v8 = vadd.f32 %v2444_v6, %v2371_v5 }
 0x8b8   : > { %v3377_v9 = vpop.f32.mrf.mxu1 }
 0x8b9   : > { %v2449_v10 = vmul.f32 100.0, %v2448_v8 }
 0x8bb   : > { %v2450_v11 = vmin.f32 %v2449_v10, 20.0  ;;  %vm2457_vm5 = vcmp.gt.f32.partialorder %v2449_v10, 20.0 }
 0x8bd   : > { %v2451_v12 = vmul.f32 1.442695, %v2450_v11 }
 0x8bf   : > { %3465 = vpow2.f32 %v2451_v12 }
 0x8cc   : > { %v3466_v13 = vpop.eup %3465 }
 0x8cd   : > { %v2453_v14 = vadd.f32 1.0, %v3466_v13 }
 0x8cf   : > { %3467 = vlog2.f32 %v2453_v14 }
 0x8dc   : > { %v3468_v15 = vpop.eup %3467 }
 0x8dd   : > { %v2455_v16 = vmul.f32 0.6931472, %v3468_v15 }
 0x8df   : > { %v2456_v17 = vmul.f32 0.01, %v2455_v16 }
 0x8e1   : > { %v2458_v18 = vsel %vm2457_vm5, %v2448_v8, %v2456_v17 }
 0x8e2   : > { %3387 = vmatmul.mubr.msk.f32.vlgmr.msra.gmra.mxu0 %vm2220_vm3, %v2458_v18 }
 0x9a2   : > { %v2533_v23 = vpop.f32.mrf.mxu0 }
 0x9a3   : > { %v2534_v24 = vadd.f32 %v2533_v23, %v2463_v21 }
 0x9a4   : > { %v3388_v26 = vpop.f32.mrf.mxu0 }
 0x9a5   : > { %v2537_v27 = vmul.f32 100.0, %v2534_v24 }
 0x9a7   : > { %v2538_v28 = vmin.f32 %v2537_v27, 20.0  ;;  %vm2545_vm6 = vcmp.gt.f32.partialorder %v2537_v27, 20.0 }
 0x9a9   : > { %v2539_v22 = vmul.f32 1.442695, %v2538_v28 }
 0x9ab   : > { %3469 = vpow2.f32 %v2539_v22 }
 0x9b8   : > { %v3470_v29 = vpop.eup %3469 }
 0x9b9   : > { %v2541_v30 = vadd.f32 1.0, %v3470_v29 }
 0x9bb   : > { %3471 = vlog2.f32 %v2541_v30 }
 0x9c8   : > { %v3472_v25 = vpop.eup %3471 }
 0x9c9   : > { %v2543_v31 = vmul.f32 0.6931472, %v3472_v25 }
 0x9cb   : > { %v2544_v32 = vmul.f32 0.01, %v2543_v31 }
 0x9cd   : > { %v2546_v33 = vsel %vm2545_vm6, %v2534_v24, %v2544_v32 }
 0x9ce   : > { %3394 = vmatmul.mubr.msk.f32.vlgmr.msra.gmra.mxu1 %vm2297_vm4, %v2546_v33 }
 0xa8e   : > { %v2619_v35 = vpop.f32.mrf.mxu1 }
 0xa8f   : > { %v2620_v36 = vadd.f32 %v2619_v35, %v2549_v34 }
 0xa90   : > { %v3395_v37 = vpop.f32.mrf.mxu1 }
 0xa91   : > { %v2624_v38 = vsel %vm2623_vm7, %v2620_v36, -inf }
 0xa92   : > { %2625 = vmax.xlane.f32.xlu0 %v2624_v38 }
 0xb1b   : > { %v2626_v39 = vpop.xlane.xlu0 %2625 }
 0xb1c   : > { %v2627_v40 = vsub.f32 %v2620_v36, %v2626_v39 }
 0xb1e   : > { %v2628_v41 = vmul.f32 1.442695, %v2627_v40 }
 0xb20   : > { %3473 = vpow2.f32 %v2628_v41 }
 0xb2d   : > { %v3474_v42 = vpop.eup %3473 }
 0xb2e   : > { %v2630_v43 = vsel %vm2623_vm7, %v3474_v42, 0.0 }
 0xb2f   : > { %2631 = vadd.xlane.f32.xlu0 %v2630_v43 }
 0xbb8   : > { %v2632_v44 = vpop.xlane.xlu0 %2631 }
 0xbb9   : > { %3475 = vlog2.f32 %v2632_v44 }
 0xbc6   : > { %v3476_v45 = vpop.eup %3475 }
 0xbc7   : > { %v2634_v46 = vmul.f32 0.6931472, %v3476_v45 }
 0xbc9   : > { %v2635_v47 = vadd.f32 %v2634_v46, %v2626_v39 }
 0xbcb   : > { %v2636_v48 = vsub.f32 %v2620_v36, %v2635_v47 }
 0xbcd   : > { %2637 = vst.msk [vmem:[%s594_s25] sm:$0x1] %vm2623_vm7, %v2636_v48 }
 0xbce   : > { %3490 = shalt.err (!%p3487_p3)
}
 0xbcf   : > { %s3491_s2 = scalar_lea.hbm %s2649_s28, 16  ;;  %s3495_s25 = scalar_lea.hbm %s4362_s19, 32 }
 0xbd0   : > { %p3492_p4 = scmp.ne.s32.totalorder %s2649_s28, %s3491_s2  ;;  %p3496_p9 = scmp.lt.s32.totalorder %s2649_s28, %s4362_s19 }
 0xbd1   : > { %p3497_p10 = scmp.lt.s32.totalorder %s3495_s25, %s3491_s2 }
 0xbd2   : > { %p3493_p7 = pnand %p3492_p4, %p3680_p5 }
 0xbd3   : > { %p3498_p11 = por %p3497_p10, %p3496_p9 }
 0xbd4   : > { %p3494_p8 = pneg %p3493_p7 }
 0xbd6   : > { %p3499_p12 = pnand %p3498_p11, %p3494_p8 }
 0xbd8   : > { %3502 = shalt.err (!%p3499_p12)
}
 0xbd9   : > { %3396 = dma.vmem_to_hbm [thread:$0]  (%p3680_p5), %s2652_s26, 16, %s2649_s28, %s2639_s22  }
 0xbda PF: > { %s4391_s4 = sld [smem:[#allocation7_spill]] }
 0xbdb   : > { %s4392_s23 = sld [smem:[#allocation5_spill]] }
 0xbe0   : > { %p3402_p13 = scmp.ge.s32.totalorder %s4391_s4, 2 }
 0xbe1   : > { %s2663_s1 = sand.u32 1, %s4392_s23  }
 0xbe2   : > { %p3399_p0 = pnand %p3402_p13, %p3684_p6  ;;  %s2664_s0 = scalar_lea.sflag [#allocation3], %s2663_s1 }
 0xbe4   : > { %p3400_p1 = pneg %p3399_p0 }
 0xbe6   : > { %3520 = dma.done.wait (%p3400_p1), %s2664_s0, 16  }
 0xbe7   : > { %3522 = vsyncadd (%p3400_p1), %s2664_s0, 4294967280  ;;  %s4394_s21 = sld [smem:[#allocation8_spill]]  ;;  %s4397_s0 = smov %s3529_s30 }
 0xbe8   : > { %s4395_s5 = sld [smem:[#allocation6_spill]] }
 0xbe9   : > { %s4396_s20 = sld [smem:[#allocation9_spill]] }
 0xbed   : > { %p29_p2 = scmp.ge.s32.totalorder %s4394_s21, 4  }
 0xbee   : > { %s4398_s30 = smov %s4395_s5 }
 0xbef   :  { %31 = sbr.rel (!%p29_p2) target bundleno = 10 (0xa), region = 140 }
 0xbf4   :  { %2668 = vsyncpa [#allocation3], 1 }
 0xbf5   :  { %2670 = vsyncpa [#allocation3 + $0x1], 1 }

</bundles_post_ra>
